<compile_context>
chip_gen: v5e
topology: v5e:2x2
jax: 0.10.0
libtpu: 0.0.40
codegen_flags: <defaults>
</compile_context>

<pallas_src>
import jax
import jax.numpy as jnp
from jax.experimental import pallas as pl
from jax.experimental.pallas import tpu as pltpu

HIDDENS = (128, 256, 512, 512, 256, 64)
LANE = 128


def _round_up(v, m):
    return (v + m - 1) // m * m


def safety_critic_kernel(x_ref,
                         w1, b1, w2, b2, w3, b3, w4, b4, w5, b5, w6, b6, w7, b7,
                         o_ref):
    h = x_ref[...]
    # fcn1..fcn6: Linear + ReLU (MXU matmul with f32 accumulation, VPU epilogue).
    for w, b in ((w1, b1), (w2, b2), (w3, b3), (w4, b4), (w5, b5), (w6, b6)):
        h = jnp.dot(h, w[...], preferred_element_type=jnp.float32) + b[...]
        h = jnp.maximum(h, 0.0)
    # fcn7: Linear, no activation.
    z = jnp.dot(h, w7[...], preferred_element_type=jnp.float32) + b7[...]
    o_ref[...] = z.astype(o_ref.dtype)


def safety_critic(x, params, *, block_b=512):
    """x: (B, n_in); params: 7 pairs (w_t, b) with w_t shaped (in, out), b shaped (out,)."""
    B, n_in = x.shape
    n_out = params[-1][0].shape[1]

    n_in_p = _round_up(n_in, LANE)          # lane-dense input
    h6_p = _round_up(HIDDENS[-1], LANE)     # 64 -> 128: lane-dense epilogue layer
    n_out_p = _round_up(n_out, LANE)        # lane-dense (unmasked) output stores

    # Batch tile: multiple of 8 sublanes, capped at block_b; pad B to a multiple.
    tb = min(block_b, _round_up(B, 8))
    b_p = _round_up(B, tb)

    # ---- zero-pad operands in the wrapper (exact: relu(0)=0, 0*w contributes 0) ----
    xp = jnp.zeros((b_p, n_in_p), jnp.float32).at[:B, :n_in].set(x)

    def pad2(a, rows, cols):
        out = jnp.zeros((rows, cols), jnp.float32)
        return out.at[:a.shape[0], :a.shape[1]].set(a)

    dims_in = (n_in_p, 128, 256, 512, 512, 256, h6_p)
    dims_out = (128, 256, 512, 512, 256, h6_p, n_out_p)

    flat_wb, wb_specs = [], []
    for li, (w, b) in enumerate(params):
        wp = pad2(w, dims_in[li], dims_out[li])
        bp = pad2(b.reshape(1, -1), 1, dims_out[li])
        flat_wb += [wp, bp]
        wb_specs += [
            pl.BlockSpec(wp.shape, lambda i: (0, 0)),   # resident across the grid
            pl.BlockSpec(bp.shape, lambda i: (0, 0)),
        ]

    flops = 2 * b_p * sum(di * do for di, do in zip(dims_in, dims_out))
    bytes_accessed = 4 * (xp.size + b_p * n_out_p + sum(a.size for a in flat_wb))

    out = pl.pallas_call(
        safety_critic_kernel,
        out_shape=jax.ShapeDtypeStruct((b_p, n_out_p), jnp.float32),
        grid=(b_p // tb,),
        in_specs=[pl.BlockSpec((tb, n_in_p), lambda i: (i, 0))] + wb_specs,
        out_specs=pl.BlockSpec((tb, n_out_p), lambda i: (i, 0)),
        compiler_params=pltpu.CompilerParams(
            dimension_semantics=("parallel",)),
        cost_estimate=pl.CostEstimate(
            flops=flops, transcendentals=0, bytes_accessed=bytes_accessed),
    )(xp, *flat_wb)
    return out[:B, :n_out]


def init_params(key, n_in, n_out):
    """Mimics nn.Linear's U(-1/sqrt(fan_in), 1/sqrt(fan_in)) init; W stored as (in, out)."""
    dims = (n_in,) + HIDDENS + (n_out,)
    keys = jax.random.split(key, 2 * (len(dims) - 1))
    params = []
    for li in range(len(dims) - 1):
        fan_in, fan_out = dims[li], dims[li + 1]
        bound = 1.0 / jnp.sqrt(fan_in)
        w = jax.random.uniform(keys[2 * li], (fan_in, fan_out), jnp.float32, -bound, bound)
        b = jax.random.uniform(keys[2 * li + 1], (fan_out,), jnp.float32, -bound, bound)
        params.append((w, b))
    return params


if __name__ == "__main__":
    key = jax.random.PRNGKey(0)
    k_x, k_p = jax.random.split(key)

    batch, n_in, n_out = 8, 24, 2
    x = jax.random.normal(k_x, (batch, n_in), jnp.float32)
    params = init_params(k_p, n_in, n_out)

    out = safety_critic(x, params)
    out = jax.block_until_ready(out)

    # Reference in plain JAX (same math as the PyTorch forward).
    ref = x
    for li, (w, b) in enumerate(params):
        ref = ref @ w + b
        if li < len(params) - 1:
            ref = jnp.maximum(ref, 0.0)

    assert out.shape == (batch, n_out)
    assert jnp.allclose(out, ref, atol=1e-3, rtol=1e-3)

    print("KERNEL_OK")
</pallas_src>

<mosaic_0001>
module attributes {stable_mosaic.version = 11 : i64} {
  func.func @safety_critic_kernel(%arg0: i32, %arg1: memref<8x128xf32, #tpu.memory_space<vmem>>, %arg2: memref<128x128xf32, #tpu.memory_space<vmem>>, %arg3: memref<1x128xf32, #tpu.memory_space<vmem>>, %arg4: memref<128x256xf32, #tpu.memory_space<vmem>>, %arg5: memref<1x256xf32, #tpu.memory_space<vmem>>, %arg6: memref<256x512xf32, #tpu.memory_space<vmem>>, %arg7: memref<1x512xf32, #tpu.memory_space<vmem>>, %arg8: memref<512x512xf32, #tpu.memory_space<vmem>>, %arg9: memref<1x512xf32, #tpu.memory_space<vmem>>, %arg10: memref<512x256xf32, #tpu.memory_space<vmem>>, %arg11: memref<1x256xf32, #tpu.memory_space<vmem>>, %arg12: memref<256x128xf32, #tpu.memory_space<vmem>>, %arg13: memref<1x128xf32, #tpu.memory_space<vmem>>, %arg14: memref<128x128xf32, #tpu.memory_space<vmem>>, %arg15: memref<1x128xf32, #tpu.memory_space<vmem>>, %arg16: memref<8x128xf32, #tpu.memory_space<vmem>>) attributes {dimension_semantics = [#tpu.dimension_semantics<parallel>], iteration_bounds = array<i64: 1>, scalar_prefetch = 0 : i64, scratch_operands = 0 : i64, tpu.core_type = #tpu.core_type<tc>, window_params = [{transform_indices = @transform_0, window_bounds = array<i64: 8, 128>}, {pipeline_mode = #tpu.pipeline_mode<synchronous>, transform_indices = @transform_1, window_bounds = array<i64: 128, 128>}, {pipeline_mode = #tpu.pipeline_mode<synchronous>, transform_indices = @transform_2, window_bounds = array<i64: 1, 128>}, {pipeline_mode = #tpu.pipeline_mode<synchronous>, transform_indices = @transform_3, window_bounds = array<i64: 128, 256>}, {pipeline_mode = #tpu.pipeline_mode<synchronous>, transform_indices = @transform_4, window_bounds = array<i64: 1, 256>}, {pipeline_mode = #tpu.pipeline_mode<synchronous>, transform_indices = @transform_5, window_bounds = array<i64: 256, 512>}, {pipeline_mode = #tpu.pipeline_mode<synchronous>, transform_indices = @transform_6, window_bounds = array<i64: 1, 512>}, {pipeline_mode = #tpu.pipeline_mode<synchronous>, transform_indices = @transform_7, window_bounds = array<i64: 512, 512>}, {pipeline_mode = #tpu.pipeline_mode<synchronous>, transform_indices = @transform_8, window_bounds = array<i64: 1, 512>}, {pipeline_mode = #tpu.pipeline_mode<synchronous>, transform_indices = @transform_9, window_bounds = array<i64: 512, 256>}, {pipeline_mode = #tpu.pipeline_mode<synchronous>, transform_indices = @transform_10, window_bounds = array<i64: 1, 256>}, {pipeline_mode = #tpu.pipeline_mode<synchronous>, transform_indices = @transform_11, window_bounds = array<i64: 256, 128>}, {pipeline_mode = #tpu.pipeline_mode<synchronous>, transform_indices = @transform_12, window_bounds = array<i64: 1, 128>}, {pipeline_mode = #tpu.pipeline_mode<synchronous>, transform_indices = @transform_13, window_bounds = array<i64: 128, 128>}, {pipeline_mode = #tpu.pipeline_mode<synchronous>, transform_indices = @transform_14, window_bounds = array<i64: 1, 128>}, {transform_indices = @transform_15, window_bounds = array<i64: 8, 128>}]} {
    %c0 = arith.constant 0 : index
    %c0_0 = arith.constant 0 : index
    %0 = vector.load %arg1[%c0, %c0_0] : memref<8x128xf32, #tpu.memory_space<vmem>>, vector<8x128xf32>
    %c0_1 = arith.constant 0 : index
    %c0_2 = arith.constant 0 : index
    %1 = vector.load %arg2[%c0_1, %c0_2] : memref<128x128xf32, #tpu.memory_space<vmem>>, vector<128x128xf32>
    %cst = arith.constant dense<0.000000e+00> : vector<8x128xf32>
    %2 = tpu.matmul %0, %1, %cst {dimension_numbers = #tpu.dot_dimension_numbers<[1], [0], [0], [1], [0, 0, 1, 1], [], []>} : vector<8x128xf32>, vector<128x128xf32>, vector<8x128xf32> -> vector<8x128xf32>
    %c0_3 = arith.constant 0 : index
    %c0_4 = arith.constant 0 : index
    %3 = vector.load %arg3[%c0_3, %c0_4] : memref<1x128xf32, #tpu.memory_space<vmem>>, vector<1x128xf32>
    %4 = vector.broadcast %3 : vector<1x128xf32> to vector<8x128xf32>
    %5 = arith.addf %2, %4 : vector<8x128xf32>
    %cst_5 = arith.constant 0.000000e+00 : f32
    %6 = vector.broadcast %cst_5 : f32 to vector<8x128xf32>
    %7 = arith.maximumf %5, %6 : vector<8x128xf32>
    %c0_6 = arith.constant 0 : index
    %c0_7 = arith.constant 0 : index
    %8 = vector.load %arg4[%c0_6, %c0_7] : memref<128x256xf32, #tpu.memory_space<vmem>>, vector<128x256xf32>
    %cst_8 = arith.constant dense<0.000000e+00> : vector<8x256xf32>
    %9 = tpu.matmul %7, %8, %cst_8 {dimension_numbers = #tpu.dot_dimension_numbers<[1], [0], [0], [1], [0, 0, 1, 1], [], []>} : vector<8x128xf32>, vector<128x256xf32>, vector<8x256xf32> -> vector<8x256xf32>
    %c0_9 = arith.constant 0 : index
    %c0_10 = arith.constant 0 : index
    %10 = vector.load %arg5[%c0_9, %c0_10] : memref<1x256xf32, #tpu.memory_space<vmem>>, vector<1x256xf32>
    %11 = vector.broadcast %10 : vector<1x256xf32> to vector<8x256xf32>
    %12 = arith.addf %9, %11 : vector<8x256xf32>
    %cst_11 = arith.constant 0.000000e+00 : f32
    %13 = vector.broadcast %cst_11 : f32 to vector<8x256xf32>
    %14 = arith.maximumf %12, %13 : vector<8x256xf32>
    %c0_12 = arith.constant 0 : index
    %c0_13 = arith.constant 0 : index
    %15 = vector.load %arg6[%c0_12, %c0_13] : memref<256x512xf32, #tpu.memory_space<vmem>>, vector<256x512xf32>
    %cst_14 = arith.constant dense<0.000000e+00> : vector<8x512xf32>
    %16 = tpu.matmul %14, %15, %cst_14 {dimension_numbers = #tpu.dot_dimension_numbers<[1], [0], [0], [1], [0, 0, 1, 1], [], []>} : vector<8x256xf32>, vector<256x512xf32>, vector<8x512xf32> -> vector<8x512xf32>
    %c0_15 = arith.constant 0 : index
    %c0_16 = arith.constant 0 : index
    %17 = vector.load %arg7[%c0_15, %c0_16] : memref<1x512xf32, #tpu.memory_space<vmem>>, vector<1x512xf32>
    %18 = vector.broadcast %17 : vector<1x512xf32> to vector<8x512xf32>
    %19 = arith.addf %16, %18 : vector<8x512xf32>
    %cst_17 = arith.constant 0.000000e+00 : f32
    %20 = vector.broadcast %cst_17 : f32 to vector<8x512xf32>
    %21 = arith.maximumf %19, %20 : vector<8x512xf32>
    %c0_18 = arith.constant 0 : index
    %c0_19 = arith.constant 0 : index
    %22 = vector.load %arg8[%c0_18, %c0_19] : memref<512x512xf32, #tpu.memory_space<vmem>>, vector<512x512xf32>
    %cst_20 = arith.constant dense<0.000000e+00> : vector<8x512xf32>
    %23 = tpu.matmul %21, %22, %cst_20 {dimension_numbers = #tpu.dot_dimension_numbers<[1], [0], [0], [1], [0, 0, 1, 1], [], []>} : vector<8x512xf32>, vector<512x512xf32>, vector<8x512xf32> -> vector<8x512xf32>
    %c0_21 = arith.constant 0 : index
    %c0_22 = arith.constant 0 : index
    %24 = vector.load %arg9[%c0_21, %c0_22] : memref<1x512xf32, #tpu.memory_space<vmem>>, vector<1x512xf32>
    %25 = vector.broadcast %24 : vector<1x512xf32> to vector<8x512xf32>
    %26 = arith.addf %23, %25 : vector<8x512xf32>
    %cst_23 = arith.constant 0.000000e+00 : f32
    %27 = vector.broadcast %cst_23 : f32 to vector<8x512xf32>
    %28 = arith.maximumf %26, %27 : vector<8x512xf32>
    %c0_24 = arith.constant 0 : index
    %c0_25 = arith.constant 0 : index
    %29 = vector.load %arg10[%c0_24, %c0_25] : memref<512x256xf32, #tpu.memory_space<vmem>>, vector<512x256xf32>
    %cst_26 = arith.constant dense<0.000000e+00> : vector<8x256xf32>
    %30 = tpu.matmul %28, %29, %cst_26 {dimension_numbers = #tpu.dot_dimension_numbers<[1], [0], [0], [1], [0, 0, 1, 1], [], []>} : vector<8x512xf32>, vector<512x256xf32>, vector<8x256xf32> -> vector<8x256xf32>
    %c0_27 = arith.constant 0 : index
    %c0_28 = arith.constant 0 : index
    %31 = vector.load %arg11[%c0_27, %c0_28] : memref<1x256xf32, #tpu.memory_space<vmem>>, vector<1x256xf32>
    %32 = vector.broadcast %31 : vector<1x256xf32> to vector<8x256xf32>
    %33 = arith.addf %30, %32 : vector<8x256xf32>
    %cst_29 = arith.constant 0.000000e+00 : f32
    %34 = vector.broadcast %cst_29 : f32 to vector<8x256xf32>
    %35 = arith.maximumf %33, %34 : vector<8x256xf32>
    %c0_30 = arith.constant 0 : index
    %c0_31 = arith.constant 0 : index
    %36 = vector.load %arg12[%c0_30, %c0_31] : memref<256x128xf32, #tpu.memory_space<vmem>>, vector<256x128xf32>
    %cst_32 = arith.constant dense<0.000000e+00> : vector<8x128xf32>
    %37 = tpu.matmul %35, %36, %cst_32 {dimension_numbers = #tpu.dot_dimension_numbers<[1], [0], [0], [1], [0, 0, 1, 1], [], []>} : vector<8x256xf32>, vector<256x128xf32>, vector<8x128xf32> -> vector<8x128xf32>
    %c0_33 = arith.constant 0 : index
    %c0_34 = arith.constant 0 : index
    %38 = vector.load %arg13[%c0_33, %c0_34] : memref<1x128xf32, #tpu.memory_space<vmem>>, vector<1x128xf32>
    %39 = vector.broadcast %38 : vector<1x128xf32> to vector<8x128xf32>
    %40 = arith.addf %37, %39 : vector<8x128xf32>
    %cst_35 = arith.constant 0.000000e+00 : f32
    %41 = vector.broadcast %cst_35 : f32 to vector<8x128xf32>
    %42 = arith.maximumf %40, %41 : vector<8x128xf32>
    %c0_36 = arith.constant 0 : index
    %c0_37 = arith.constant 0 : index
    %43 = vector.load %arg14[%c0_36, %c0_37] : memref<128x128xf32, #tpu.memory_space<vmem>>, vector<128x128xf32>
    %cst_38 = arith.constant dense<0.000000e+00> : vector<8x128xf32>
    %44 = tpu.matmul %42, %43, %cst_38 {dimension_numbers = #tpu.dot_dimension_numbers<[1], [0], [0], [1], [0, 0, 1, 1], [], []>} : vector<8x128xf32>, vector<128x128xf32>, vector<8x128xf32> -> vector<8x128xf32>
    %c0_39 = arith.constant 0 : index
    %c0_40 = arith.constant 0 : index
    %45 = vector.load %arg15[%c0_39, %c0_40] : memref<1x128xf32, #tpu.memory_space<vmem>>, vector<1x128xf32>
    %46 = vector.broadcast %45 : vector<1x128xf32> to vector<8x128xf32>
    %47 = arith.addf %44, %46 : vector<8x128xf32>
    %c0_41 = arith.constant 0 : index
    %c0_42 = arith.constant 0 : index
    %48 = vector.load %arg16[%c0_41, %c0_42] : memref<8x128xf32, #tpu.memory_space<vmem>>, vector<8x128xf32>
    tpu.vector_store %arg16[%c0_41, %c0_42], %47 {strides = array<i32>} : memref<8x128xf32, #tpu.memory_space<vmem>>, vector<8x128xf32>,
    return
  }
  func.func @transform_0(%arg0: i32) -> (i32, i32) {
    %c0_i32 = arith.constant 0 : i32
    %c0_i32_0 = arith.constant 0 : i32
    return %arg0, %c0_i32 : i32, i32
  }
  func.func @transform_1(%arg0: i32) -> (i32, i32) {
    %c0_i32 = arith.constant 0 : i32
    %c0_i32_0 = arith.constant 0 : i32
    %c0_i32_1 = arith.constant 0 : i32
    return %c0_i32, %c0_i32_0 : i32, i32
  }
  func.func @transform_2(%arg0: i32) -> (i32, i32) {
    %c0_i32 = arith.constant 0 : i32
    %c0_i32_0 = arith.constant 0 : i32
    %c0_i32_1 = arith.constant 0 : i32
    return %c0_i32, %c0_i32_0 : i32, i32
  }
  func.func @transform_3(%arg0: i32) -> (i32, i32) {
    %c0_i32 = arith.constant 0 : i32
    %c0_i32_0 = arith.constant 0 : i32
    %c0_i32_1 = arith.constant 0 : i32
    return %c0_i32, %c0_i32_0 : i32, i32
  }
  func.func @transform_4(%arg0: i32) -> (i32, i32) {
    %c0_i32 = arith.constant 0 : i32
    %c0_i32_0 = arith.constant 0 : i32
    %c0_i32_1 = arith.constant 0 : i32
    return %c0_i32, %c0_i32_0 : i32, i32
  }
  func.func @transform_5(%arg0: i32) -> (i32, i32) {
    %c0_i32 = arith.constant 0 : i32
    %c0_i32_0 = arith.constant 0 : i32
    %c0_i32_1 = arith.constant 0 : i32
    return %c0_i32, %c0_i32_0 : i32, i32
  }
  func.func @transform_6(%arg0: i32) -> (i32, i32) {
    %c0_i32 = arith.constant 0 : i32
    %c0_i32_0 = arith.constant 0 : i32
    %c0_i32_1 = arith.constant 0 : i32
    return %c0_i32, %c0_i32_0 : i32, i32
  }
  func.func @transform_7(%arg0: i32) -> (i32, i32) {
    %c0_i32 = arith.constant 0 : i32
    %c0_i32_0 = arith.constant 0 : i32
    %c0_i32_1 = arith.constant 0 : i32
    return %c0_i32, %c0_i32_0 : i32, i32
  }
  func.func @transform_8(%arg0: i32) -> (i32, i32) {
    %c0_i32 = arith.constant 0 : i32
    %c0_i32_0 = arith.constant 0 : i32
    %c0_i32_1 = arith.constant 0 : i32
    return %c0_i32, %c0_i32_0 : i32, i32
  }
  func.func @transform_9(%arg0: i32) -> (i32, i32) {
    %c0_i32 = arith.constant 0 : i32
    %c0_i32_0 = arith.constant 0 : i32
    %c0_i32_1 = arith.constant 0 : i32
    return %c0_i32, %c0_i32_0 : i32, i32
  }
  func.func @transform_10(%arg0: i32) -> (i32, i32) {
    %c0_i32 = arith.constant 0 : i32
    %c0_i32_0 = arith.constant 0 : i32
    %c0_i32_1 = arith.constant 0 : i32
    return %c0_i32, %c0_i32_0 : i32, i32
  }
  func.func @transform_11(%arg0: i32) -> (i32, i32) {
    %c0_i32 = arith.constant 0 : i32
    %c0_i32_0 = arith.constant 0 : i32
    %c0_i32_1 = arith.constant 0 : i32
    return %c0_i32, %c0_i32_0 : i32, i32
  }
  func.func @transform_12(%arg0: i32) -> (i32, i32) {
    %c0_i32 = arith.constant 0 : i32
    %c0_i32_0 = arith.constant 0 : i32
    %c0_i32_1 = arith.constant 0 : i32
    return %c0_i32, %c0_i32_0 : i32, i32
  }
  func.func @transform_13(%arg0: i32) -> (i32, i32) {
    %c0_i32 = arith.constant 0 : i32
    %c0_i32_0 = arith.constant 0 : i32
    %c0_i32_1 = arith.constant 0 : i32
    return %c0_i32, %c0_i32_0 : i32, i32
  }
  func.func @transform_14(%arg0: i32) -> (i32, i32) {
    %c0_i32 = arith.constant 0 : i32
    %c0_i32_0 = arith.constant 0 : i32
    %c0_i32_1 = arith.constant 0 : i32
    return %c0_i32, %c0_i32_0 : i32, i32
  }
  func.func @transform_15(%arg0: i32) -> (i32, i32) {
    %c0_i32 = arith.constant 0 : i32
    %c0_i32_0 = arith.constant 0 : i32
    return %arg0, %c0_i32 : i32, i32
  }
}

</mosaic_0001>

<bundles_post_ra>
// kernel: tpu_custom_call.1
= control target key start
LH: loop header
LB: loop body
LE: loop exit
PB: predicated region body
PF: predicated region fallthrough
CT: control target
= control target key end

     0   :  { %20 = vsyncpa [#allocation3], 0  ;;  %s2184_s0 = inlined_call_operand.hbm [shape: f32[8,128], index: 0, kind: input, shape index: {}]   ;;  %s2185_s1 = inlined_call_operand.hbm [shape: f32[128,128], index: 1, kind: input, shape index: {}]   ;;  %s2186_s2 = inlined_call_operand.hbm [shape: f32[1,128], index: 2, kind: input, shape index: {}]   ;;  %s2187_s3 = inlined_call_operand.hbm [shape: f32[128,256], index: 3, kind: input, shape index: {}]   ;;  %s2188_s4 = inlined_call_operand.hbm [shape: f32[1,256], index: 4, kind: input, shape index: {}]   ;;  %s2189_s5 = inlined_call_operand.hbm [shape: f32[256,512], index: 5, kind: input, shape index: {}]   ;;  %s2190_s6 = inlined_call_operand.vmem [shape: f32[1,512], index: 6, kind: input, shape index: {}]   ;;  %s2191_s7 = inlined_call_operand.hbm [shape: f32[512,512], index: 7, kind: input, shape index: {}]   ;;  %s2192_s8 = inlined_call_operand.hbm [shape: f32[1,512], index: 8, kind: input, shape index: {}]   ;;  %s2193_s9 = inlined_call_operand.hbm [shape: f32[512,256], index: 9, kind: input, shape index: {}]   ;;  %s2194_s10 = inlined_call_operand.vmem [shape: f32[1,256], index: 10, kind: input, shape index: {}]   ;;  %s2195_s11 = inlined_call_operand.hbm [shape: f32[256,128], index: 11, kind: input, shape index: {}]   ;;  %s2196_s12 = inlined_call_operand.vmem [shape: f32[1,128], index: 12, kind: input, shape index: {}]   ;;  %s2197_s13 = inlined_call_operand.hbm [shape: f32[128,128], index: 13, kind: input, shape index: {}]   ;;  %s2198_s14 = inlined_call_operand.vmem [shape: f32[1,128], index: 14, kind: input, shape index: {}]   ;;  %s2199_s15 = inlined_call_operand.hbm [shape: f32[8,128], index: 15, kind: output, shape index: {}]  }
   0x1   :  { %21 = vsyncpa [#allocation6], 0 }
   0x2   :  { %22 = vsyncpa [#allocation9], 0 }
   0x3   :  { %23 = vsyncpa [#allocation12], 0 }
   0x4   :  { %24 = vsyncpa [#allocation15], 0 }
   0x5   :  { %25 = vsyncpa [#allocation18], 0  ;;  %s42_s20 = sshll.u32 %s2185_s1, 4  ;;  %s43_s20 = int_to_ptr.hbm [resolvable:$true] %s42_s20 }
   0x6   :  { %26 = vsyncpa [#allocation4], 0  ;;  %s1987_s21 = smov [#allocation5]   ;;  %s66_s25 = sshll.u32 %s2187_s3, 4  ;;  %s67_s25 = int_to_ptr.hbm [resolvable:$true] %s66_s25 }
   0x7   :  { %s44_s22 = sshll.u32 %s1987_s21, 4  ;;  %s1988_s26 = smov 128   ;;  %s45_s22 = int_to_ptr.vmem [resolvable:$true] %s44_s22 }
   0x8   :  { %s1989_s27 = smov 8   ;;  %s1990_s28 = smov [#allocation8]  }
   0x9   :  { %50 = dma.hbm_to_vmem [thread:$0]  %s43_s20, 2048, %s45_s22, [#allocation6], %s1988_s26, %s1988_s26, %s1989_s27  }
   0xa   :  { %s68_s29 = sshll.u32 %s1990_s28, 4  ;;  %s1991_s1 = smov 256   ;;  %s69_s29 = int_to_ptr.vmem [resolvable:$true] %s68_s29 }
   0xb   :  { %s1992_s30 = smov 16   ;;  %s90_s3 = sshll.u32 %s2189_s5, 4  ;;  %s91_s3 = int_to_ptr.hbm [resolvable:$true] %s90_s3 }
   0xc   :  { %74 = dma.hbm_to_vmem [thread:$0]  %s67_s25, 4096, %s69_s29, [#allocation9], %s1991_s1, %s1991_s1, %s1992_s30  }
   0xd   :  { %s1993_s18 = smov [#allocation11]   ;;  %s119_s22 = sshll.u32 %s2192_s8, 4  ;;  %s120_s22 = int_to_ptr.hbm [resolvable:$true] %s119_s22 }
   0xe   :  { %s92_s19 = sshll.u32 %s1993_s18, 4  ;;  %s1994_s23 = smov 512   ;;  %s93_s19 = int_to_ptr.vmem [resolvable:$true] %s92_s19 }
   0xf   :  { %s1995_s24 = smov 32   ;;  %s1996_s25 = smov [#allocation14]  }
  0x10   :  { %98 = dma.hbm_to_vmem [thread:$0]  %s91_s3, 16384, %s93_s19, [#allocation12], %s1994_s23, %s1994_s23, %s1995_s24  }
  0x11   :  { %s121_s28 = sshll.u32 %s1996_s25, 4  ;;  %s144_s5 = sshll.u32 %s2195_s11, 4  ;;  %s122_s28 = int_to_ptr.vmem [resolvable:$true] %s121_s28  ;;  %s145_s5 = int_to_ptr.hbm [resolvable:$true] %s144_s5 }
  0x12   :  { %124 = dma.hbm_to_vmem [thread:$0]  %s120_s22, 64, %s122_s28, [#allocation15]  }
  0x13   :  { %s32_s8 = sshll.u32 %s2184_s0, 4  ;;  %s1997_s21 = smov [#allocation17]   ;;  %s33_s8 = int_to_ptr.hbm [resolvable:$true] %s32_s8 }
  0x14   :  { %s146_s20 = sshll.u32 %s1997_s21, 4  ;;  %s1998_s3 = smov [#allocation2]   ;;  %s147_s20 = int_to_ptr.vmem [resolvable:$true] %s146_s20 }
  0x15   :  { %152 = dma.hbm_to_vmem [thread:$0]  %s145_s5, 4096, %s147_s20, [#allocation18], %s1988_s26, %s1988_s26, %s1989_s27  }
  0x16   :  { %s34_s19 = sshll.u32 %s1998_s3, 4  ;;  %s56_s11 = sshll.u32 %s2186_s2, 4  ;;  %s35_s19 = int_to_ptr.vmem [resolvable:$true] %s34_s19  ;;  %s57_s11 = int_to_ptr.hbm [resolvable:$true] %s56_s11 }
  0x17   :  { %37 = dma.hbm_to_vmem [thread:$0]  %s33_s8, 128, %s35_s19, [#allocation3]  }
  0x18   :  { %s80_s0 = sshll.u32 %s2188_s4, 4  ;;  %s1999_s16 = smov [#allocation7]   ;;  %s81_s0 = int_to_ptr.hbm [resolvable:$true] %s80_s0 }
  0x19   :  { %s58_s17 = sshll.u32 %s1999_s16, 4  ;;  %s2000_s18 = smov [#allocation10]   ;;  %s59_s17 = int_to_ptr.vmem [resolvable:$true] %s58_s17 }
  0x1a   :  { %61 = dma.hbm_to_vmem [thread:$0]  %s57_s11, 16, %s59_s17, [#allocation6]  }
  0x1b   :  { %s82_s5 = sshll.u32 %s2000_s18, 4  ;;  %s105_s3 = sshll.u32 %s2191_s7, 4  ;;  %s83_s5 = int_to_ptr.vmem [resolvable:$true] %s82_s5  ;;  %s106_s3 = int_to_ptr.hbm [resolvable:$true] %s105_s3 }
  0x1c   :  { %85 = dma.hbm_to_vmem [thread:$0]  %s81_s0, 32, %s83_s5, [#allocation9]  }
  0x1d   :  { %s129_s19 = sshll.u32 %s2193_s9, 4  ;;  %s2001_s25 = smov [#allocation13]   ;;  %s130_s19 = int_to_ptr.hbm [resolvable:$true] %s129_s19 }
  0x1e   :  { %s107_s4 = sshll.u32 %s2001_s25, 4  ;;  %s2002_s29 = smov [#allocation16]   ;;  %s108_s4 = int_to_ptr.vmem [resolvable:$true] %s107_s4 }
  0x1f   :  { %113 = dma.hbm_to_vmem [thread:$0]  %s106_s3, 32768, %s108_s4, [#allocation12], %s1994_s23, %s1994_s23, %s1995_s24  }
  0x20   :  { %s131_s11 = sshll.u32 %s2002_s29, 4  ;;  %s159_s7 = sshll.u32 %s2197_s13, 4  ;;  %s132_s11 = int_to_ptr.vmem [resolvable:$true] %s131_s11  ;;  %s160_s7 = int_to_ptr.hbm [resolvable:$true] %s159_s7 }
  0x21   :  { %137 = dma.hbm_to_vmem [thread:$0]  %s130_s19, 16384, %s132_s11, [#allocation15], %s1991_s1, %s1991_s1, %s1992_s30  }
  0x22   :  { %s2003_s9 = smov [#allocation19]  }
  0x23   :  { %s161_s0 = sshll.u32 %s2003_s9, 4  ;;  %s162_s0 = int_to_ptr.vmem [resolvable:$true] %s161_s0 }
  0x24   :  { %167 = dma.hbm_to_vmem [thread:$0]  %s160_s7, 2048, %s162_s0, [#allocation18], %s1988_s26, %s1988_s26, %s1989_s27  }
  0x25   :  { %1973 = dma.done.wait [#allocation3], 128  }
  0x26   :  { %1974 = vsyncadd [#allocation3], 4294967168 }
  0x27   :  { %1975 = dma.done.wait [#allocation6], 2064  }
  0x28   :  { %1976 = vsyncadd [#allocation6], 4294965232 }
  0x29   :  { %1977 = dma.done.wait [#allocation9], 4128  }
  0x2a   :  { %1978 = vsyncadd [#allocation9], 4294963168 }
  0x2b   :  { %1979 = dma.done.wait [#allocation12], 49152  }
  0x2c   :  { %1980 = vsyncadd [#allocation12], 4294918144 }
  0x2d   :  { %1981 = dma.done.wait [#allocation15], 16448  }
  0x2e   :  { %1982 = vsyncadd [#allocation15], 4294950848 }
  0x2f   :  { %1983 = dma.done.wait [#allocation18], 6144  }
  0x30   :  { %1984 = vsyncadd [#allocation18], 4294961152  ;;  %v230_v0 = vld [vmem:[#allocation5 + $0x78] sm:$0xff]  ;;  %v229_v1 = vld [vmem:[#allocation5 + $0x70] sm:$0xff]  ;;  %s2004_s24 = smov [#allocation20]   ;;  %s1649_s5 = sshll.u32 %s2199_s15, 4  ;;  %s1650_s5 = int_to_ptr.hbm [resolvable:$true] %s1649_s5 }
  0x31   :  { %235 = vmatpush.msra.mxu0 %v230_v0  ;;  %v228_v2 = vld [vmem:[#allocation5 + $0x68] sm:$0xff]  ;;  %v227_v3 = vld [vmem:[#allocation5 + $0x60] sm:$0xff]  ;;  %v226_v4 = vld [vmem:[#allocation5 + $0x58] sm:$0xff]  ;;  %s1647_s16 = sshll.u32 %s2004_s24, 4  ;;  %s1648_s16 = int_to_ptr.vmem [resolvable:$true] %s1647_s16 }
  0x32   :  { %v286_v5 = vld [vmem:[#allocation8 + $0xf0] sm:$0xff]  ;;  %v287_v6 = vld [vmem:[#allocation8 + $0xf8] sm:$0xff]  ;;  %v284_v7 = vld [vmem:[#allocation8 + $0xe0] sm:$0xff] }
  0x33   :  { %236 = vmatpush.msra.mxu0 %v229_v1  ;;  %294 = vmatpush.msra.mxu1 %v286_v5  ;;  %v285_v8 = vld [vmem:[#allocation8 + $0xe8] sm:$0xff]  ;;  %v282_v9 = vld [vmem:[#allocation8 + $0xd0] sm:$0xff]  ;;  %v283_v11 = vld [vmem:[#allocation8 + $0xd8] sm:$0xff] }
  0x34   :  { %314 = vmatpush.msra.mxu2 %v287_v6  ;;  %v225_v10 = vld [vmem:[#allocation5 + $0x50] sm:$0xff]  ;;  %v280_v12 = vld [vmem:[#allocation8 + $0xc0] sm:$0xff]  ;;  %v279_v17 = vld [vmem:[#allocation8 + $0xb8] sm:$0xff] }
  0x35   :  { %237 = vmatpush.msra.mxu0 %v228_v2  ;;  %295 = vmatpush.msra.mxu1 %v284_v7  ;;  %v224_v13 = vld [vmem:[#allocation5 + $0x48] sm:$0xff]  ;;  %v278_v15 = vld [vmem:[#allocation8 + $0xb0] sm:$0xff]  ;;  %v223_v16 = vld [vmem:[#allocation5 + $0x40] sm:$0xff] }
  0x36   :  { %315 = vmatpush.msra.mxu2 %v285_v8  ;;  %v281_v14 = vld [vmem:[#allocation8 + $0xc8] sm:$0xff]  ;;  %v276_v18 = vld [vmem:[#allocation8 + $0xa0] sm:$0xff]  ;;  %v222_v19 = vld [vmem:[#allocation5 + $0x38] sm:$0xff] }
  0x37   :  { %238 = vmatpush.msra.mxu0 %v227_v3  ;;  %296 = vmatpush.msra.mxu1 %v282_v9  ;;  %v277_v20 = vld [vmem:[#allocation8 + $0xa8] sm:$0xff]  ;;  %v274_v21 = vld [vmem:[#allocation8 + $0x90] sm:$0xff]  ;;  %v275_v23 = vld [vmem:[#allocation8 + $0x98] sm:$0xff] }
  0x38   :  { %316 = vmatpush.msra.mxu2 %v283_v11  ;;  %v221_v22 = vld [vmem:[#allocation5 + $0x30] sm:$0xff]  ;;  %v272_v24 = vld [vmem:[#allocation8 + $0x80] sm:$0xff]  ;;  %v271_v29 = vld [vmem:[#allocation8 + $0x78] sm:$0xff] }
  0x39   :  { %239 = vmatpush.msra.mxu0 %v226_v4  ;;  %297 = vmatpush.msra.mxu1 %v280_v12  ;;  %v220_v25 = vld [vmem:[#allocation5 + $0x28] sm:$0xff]  ;;  %v270_v27 = vld [vmem:[#allocation8 + $0x70] sm:$0xff]  ;;  %v219_v28 = vld [vmem:[#allocation5 + $0x20] sm:$0xff] }
  0x3a   :  { %317 = vmatpush.msra.mxu2 %v281_v14  ;;  %v273_v26 = vld [vmem:[#allocation8 + $0x88] sm:$0xff]  ;;  %v268_v30 = vld [vmem:[#allocation8 + $0x60] sm:$0xff]  ;;  %v218_v31 = vld [vmem:[#allocation5 + $0x18] sm:$0xff] }
  0x3b   :  { %240 = vmatpush.msra.mxu0 %v225_v10  ;;  %298 = vmatpush.msra.mxu1 %v278_v15  ;;  %v269_v32 = vld [vmem:[#allocation8 + $0x68] sm:$0xff]  ;;  %v266_v33 = vld [vmem:[#allocation8 + $0x50] sm:$0xff]  ;;  %v267_v35 = vld [vmem:[#allocation8 + $0x58] sm:$0xff] }
  0x3c   :  { %318 = vmatpush.msra.mxu2 %v279_v17  ;;  %v217_v34 = vld [vmem:[#allocation5 + $0x10] sm:$0xff]  ;;  %v264_v36 = vld [vmem:[#allocation8 + $0x40] sm:$0xff]  ;;  %v263_v41 = vld [vmem:[#allocation8 + $0x38] sm:$0xff] }
  0x3d   :  { %241 = vmatpush.msra.mxu0 %v224_v13  ;;  %299 = vmatpush.msra.mxu1 %v276_v18  ;;  %v216_v37 = vld [vmem:[#allocation5 + $0x8] sm:$0xff]  ;;  %v262_v39 = vld [vmem:[#allocation8 + $0x30] sm:$0xff]  ;;  %v215_v40 = vld [vmem:[#allocation5] sm:$0xff] }
  0x3e   :  { %319 = vmatpush.msra.mxu2 %v277_v20  ;;  %v265_v38 = vld [vmem:[#allocation8 + $0x48] sm:$0xff]  ;;  %v214_v42 = vld [vmem:[#allocation2] sm:$0xff]  ;;  %v260_v43 = vld [vmem:[#allocation8 + $0x20] sm:$0xff] }
  0x3f   :  { %242 = vmatpush.msra.mxu0 %v223_v16  ;;  %300 = vmatpush.msra.mxu1 %v274_v21  ;;  %v261_v44 = vld [vmem:[#allocation8 + $0x28] sm:$0xff]  ;;  %v258_v45 = vld [vmem:[#allocation8 + $0x10] sm:$0xff]  ;;  %v259_v46 = vld [vmem:[#allocation8 + $0x18] sm:$0xff] }
  0x40   :  { %320 = vmatpush.msra.mxu2 %v275_v23  ;;  %v256_v47 = vld [vmem:[#allocation8] sm:$0xff]  ;;  %v257_v48 = vld [vmem:[#allocation8 + $0x8] sm:$0xff] }
  0x41   :  { %243 = vmatpush.msra.mxu0 %v222_v19  ;;  %301 = vmatpush.msra.mxu1 %v272_v24  ;;  %v396_v49 = vld [vmem:[#allocation11 + $0x1e0] sm:$0xff]  ;;  %v397_v50 = vld [vmem:[#allocation11 + $0x1e8] sm:$0xff] }
  0x42   :  { %321 = vmatpush.msra.mxu2 %v273_v26  ;;  %v392_v51 = vld [vmem:[#allocation11 + $0x1c0] sm:$0xff]  ;;  %474 = vmatpush.msra.mxu3 %v396_v49  ;;  %v393_v52 = vld [vmem:[#allocation11 + $0x1c8] sm:$0xff]  ;;  %v398_v49 = vld [vmem:[#allocation11 + $0x1f0] sm:$0xff] }
  0x43   :  { %244 = vmatpush.msra.mxu0 %v221_v22  ;;  %302 = vmatpush.msra.mxu1 %v270_v27  ;;  %v388_v53 = vld [vmem:[#allocation11 + $0x1a0] sm:$0xff]  ;;  %v389_v54 = vld [vmem:[#allocation11 + $0x1a8] sm:$0xff] }
  0x44   :  { %322 = vmatpush.msra.mxu2 %v271_v29  ;;  %v460_v55 = vld [vmem:[#allocation11 + $0x3e0] sm:$0xff]  ;;  %475 = vmatpush.msra.mxu3 %v392_v51  ;;  %v461_v56 = vld [vmem:[#allocation11 + $0x3e8] sm:$0xff] }
  0x45   :  { %245 = vmatpush.msra.mxu0 %v220_v25  ;;  %303 = vmatpush.msra.mxu1 %v268_v30  ;;  %v456_v57 = vld [vmem:[#allocation11 + $0x3c0] sm:$0xff]  ;;  %v385_v59 = vld [vmem:[#allocation11 + $0x188] sm:$0xff] }
  0x46   :  { %323 = vmatpush.msra.mxu2 %v269_v32  ;;  %v384_v58 = vld [vmem:[#allocation11 + $0x180] sm:$0xff]  ;;  %v457_v60 = vld [vmem:[#allocation11 + $0x3c8] sm:$0xff]  ;;  %476 = vmatpush.msra.mxu3 %v388_v53  ;;  %v394_v53 = vld [vmem:[#allocation11 + $0x1d0] sm:$0xff] }
  0x47   :  { %246 = vmatpush.msra.mxu0 %v219_v28  ;;  %304 = vmatpush.msra.mxu1 %v266_v33  ;;  %v452_v61 = vld [vmem:[#allocation11 + $0x3a0] sm:$0xff]  ;;  %v453_v62 = vld [vmem:[#allocation11 + $0x3a8] sm:$0xff] }
  0x48   :  { %324 = vmatpush.msra.mxu2 %v267_v35  ;;  %v380_v63 = vld [vmem:[#allocation11 + $0x160] sm:$0xff]  ;;  %v381_v0 = vld [vmem:[#allocation11 + $0x168] sm:$0xff]  ;;  %477 = vmatpush.msra.mxu3 %v384_v58  ;;  %v1682_v35 = vld [vmem:[#allocation7] ss:$0 sm:$0xff] }
  0x49   :  { %247 = vmatpush.msra.mxu0 %v218_v31  ;;  %305 = vmatpush.msra.mxu1 %v264_v36  ;;  %v448_v1 = vld [vmem:[#allocation11 + $0x380] sm:$0xff]  ;;  %v449_v2 = vld [vmem:[#allocation11 + $0x388] sm:$0xff]  ;;  %v391_v58 = vld [vmem:[#allocation11 + $0x1b8] sm:$0xff] }
  0x4a   :  { %325 = vmatpush.msra.mxu2 %v265_v38  ;;  %v376_v3 = vld [vmem:[#allocation11 + $0x140] sm:$0xff]  ;;  %v377_v4 = vld [vmem:[#allocation11 + $0x148] sm:$0xff]  ;;  %478 = vmatpush.msra.mxu3 %v380_v63  ;;  %v458_v63 = vld [vmem:[#allocation11 + $0x3d0] sm:$0xff] }
  0x4b   :  { %248 = vmatpush.msra.mxu0 %v217_v34  ;;  %306 = vmatpush.msra.mxu1 %v262_v39  ;;  %v444_v5 = vld [vmem:[#allocation11 + $0x360] sm:$0xff]  ;;  %v445_v6 = vld [vmem:[#allocation11 + $0x368] sm:$0xff] }
  0x4c   :  { %326 = vmatpush.msra.mxu2 %v263_v41  ;;  %v372_v7 = vld [vmem:[#allocation11 + $0x120] sm:$0xff]  ;;  %v373_v8 = vld [vmem:[#allocation11 + $0x128] sm:$0xff]  ;;  %479 = vmatpush.msra.mxu3 %v376_v3  ;;  %v454_v3 = vld [vmem:[#allocation11 + $0x3b0] sm:$0xff] }
  0x4d   :  { %249 = vmatpush.msra.mxu0 %v216_v37  ;;  %307 = vmatpush.msra.mxu1 %v260_v43  ;;  %v440_v9 = vld [vmem:[#allocation11 + $0x340] sm:$0xff]  ;;  %v441_v10 = vld [vmem:[#allocation11 + $0x348] sm:$0xff] }
  0x4e   :  { %327 = vmatpush.msra.mxu2 %v261_v44  ;;  %v368_v11 = vld [vmem:[#allocation11 + $0x100] sm:$0xff]  ;;  %v369_v12 = vld [vmem:[#allocation11 + $0x108] sm:$0xff]  ;;  %480 = vmatpush.msra.mxu3 %v372_v7  ;;  %v450_v7 = vld [vmem:[#allocation11 + $0x390] sm:$0xff] }
  0x4f   :  { %250 = vmatpush.msra.mxu0 %v215_v40  ;;  %308 = vmatpush.msra.mxu1 %v258_v45  ;;  %v436_v13 = vld [vmem:[#allocation11 + $0x320] sm:$0xff]  ;;  %v437_v14 = vld [vmem:[#allocation11 + $0x328] sm:$0xff] }
  0x50   :  { %251 = vmatmul.f32.vlgmr.msra.gmra.mxu0 %v214_v42  ;;  %328 = vmatpush.msra.mxu2 %v259_v46  ;;  %v364_v15 = vld [vmem:[#allocation11 + $0xe0] sm:$0xff]  ;;  %v365_v16 = vld [vmem:[#allocation11 + $0xe8] sm:$0xff] }
  0x51   :  { %309 = vmatpush.msra.mxu1 %v256_v47  ;;  %494 = vmatpush.msrb.mxu0 %v460_v55  ;;  %v432_v17 = vld [vmem:[#allocation11 + $0x300] sm:$0xff]  ;;  %v433_v18 = vld [vmem:[#allocation11 + $0x308] sm:$0xff] }
  0x52   :  { %329 = vmatpush.msra.mxu2 %v257_v48  ;;  %481 = vmatpush.msra.mxu3 %v368_v11  ;;  %v360_v19 = vld [vmem:[#allocation11 + $0xc0] sm:$0xff]  ;;  %v361_v20 = vld [vmem:[#allocation11 + $0xc8] sm:$0xff]  ;;  %v446_v11 = vld [vmem:[#allocation11 + $0x370] sm:$0xff] }
  0x53   :  { %514 = vmatpush.msrb.mxu1 %v397_v50  ;;  %495 = vmatpush.msrb.mxu0 %v456_v57  ;;  %v428_v21 = vld [vmem:[#allocation11 + $0x2e0] sm:$0xff]  ;;  %v429_v22 = vld [vmem:[#allocation11 + $0x2e8] sm:$0xff]  ;;  %v399_v50 = vld [vmem:[#allocation11 + $0x1f8] sm:$0xff] }
  0x54   :  { %534 = vmatpush.msrb.mxu2 %v461_v56  ;;  %482 = vmatpush.msra.mxu3 %v364_v15  ;;  %v356_v23 = vld [vmem:[#allocation11 + $0xa0] sm:$0xff]  ;;  %v357_v24 = vld [vmem:[#allocation11 + $0xa8] sm:$0xff]  ;;  %v390_v57 = vld [vmem:[#allocation11 + $0x1b0] sm:$0xff] }
  0x55   :  { %515 = vmatpush.msrb.mxu1 %v393_v52  ;;  %496 = vmatpush.msrb.mxu0 %v452_v61  ;;  %v424_v25 = vld [vmem:[#allocation11 + $0x2c0] sm:$0xff]  ;;  %v425_v26 = vld [vmem:[#allocation11 + $0x2c8] sm:$0xff]  ;;  %v386_v61 = vld [vmem:[#allocation11 + $0x190] sm:$0xff] }
  0x56   :  { %535 = vmatpush.msrb.mxu2 %v457_v60  ;;  %483 = vmatpush.msra.mxu3 %v360_v19  ;;  %v352_v27 = vld [vmem:[#allocation11 + $0x80] sm:$0xff]  ;;  %v353_v28 = vld [vmem:[#allocation11 + $0x88] sm:$0xff]  ;;  %v463_v60 = vld [vmem:[#allocation11 + $0x3f8] sm:$0xff] }
  0x57   :  { %516 = vmatpush.msrb.mxu1 %v389_v54  ;;  %497 = vmatpush.msrb.mxu0 %v448_v1  ;;  %v420_v29 = vld [vmem:[#allocation11 + $0x2a0] sm:$0xff]  ;;  %v421_v30 = vld [vmem:[#allocation11 + $0x2a8] sm:$0xff]  ;;  %v395_v54 = vld [vmem:[#allocation11 + $0x1d8] sm:$0xff] }
  0x58   :  { %536 = vmatpush.msrb.mxu2 %v453_v62  ;;  %484 = vmatpush.msra.mxu3 %v356_v23  ;;  %v348_v31 = vld [vmem:[#allocation11 + $0x60] sm:$0xff]  ;;  %v349_v32 = vld [vmem:[#allocation11 + $0x68] sm:$0xff]  ;;  %v387_v62 = vld [vmem:[#allocation11 + $0x198] sm:$0xff] }
  0x59   :  { %517 = vmatpush.msrb.mxu1 %v385_v59  ;;  %498 = vmatpush.msrb.mxu0 %v444_v5  ;;  %v416_v33 = vld [vmem:[#allocation11 + $0x280] sm:$0xff]  ;;  %v417_v34 = vld [vmem:[#allocation11 + $0x288] sm:$0xff]  ;;  %v462_v59 = vld [vmem:[#allocation11 + $0x3f0] sm:$0xff] }
  0x5a   :  { %537 = vmatpush.msrb.mxu2 %v449_v2  ;;  %485 = vmatpush.msra.mxu3 %v352_v27  ;;  %v344_v36 = vld [vmem:[#allocation11 + $0x40] sm:$0xff]  ;;  %v345_v37 = vld [vmem:[#allocation11 + $0x48] sm:$0xff]  ;;  %v382_v1 = vld [vmem:[#allocation11 + $0x170] sm:$0xff] }
  0x5b   :  { %518 = vmatpush.msrb.mxu1 %v381_v0  ;;  %499 = vmatpush.msrb.mxu0 %v440_v9  ;;  %v412_v38 = vld [vmem:[#allocation11 + $0x260] sm:$0xff]  ;;  %v413_v39 = vld [vmem:[#allocation11 + $0x268] sm:$0xff]  ;;  %v459_v0 = vld [vmem:[#allocation11 + $0x3d8] sm:$0xff] }
  0x5c   :  { %538 = vmatpush.msrb.mxu2 %v445_v6  ;;  %486 = vmatpush.msra.mxu3 %v348_v31  ;;  %v340_v40 = vld [vmem:[#allocation11 + $0x20] sm:$0xff]  ;;  %v341_v41 = vld [vmem:[#allocation11 + $0x28] sm:$0xff]  ;;  %v383_v2 = vld [vmem:[#allocation11 + $0x178] sm:$0xff] }
  0x5d   :  { %519 = vmatpush.msrb.mxu1 %v377_v4  ;;  %500 = vmatpush.msrb.mxu0 %v436_v13  ;;  %v408_v43 = vld [vmem:[#allocation11 + $0x240] sm:$0xff]  ;;  %v409_v44 = vld [vmem:[#allocation11 + $0x248] sm:$0xff]  ;;  %v455_v4 = vld [vmem:[#allocation11 + $0x3b8] sm:$0xff] }
  0x5e   :  { %539 = vmatpush.msrb.mxu2 %v441_v10  ;;  %487 = vmatpush.msra.mxu3 %v344_v36  ;;  %v336_v46 = vld [vmem:[#allocation11] sm:$0xff]  ;;  %v337_v47 = vld [vmem:[#allocation11 + $0x8] sm:$0xff]  ;;  %v378_v5 = vld [vmem:[#allocation11 + $0x150] sm:$0xff] }
  0x5f   :  { %520 = vmatpush.msrb.mxu1 %v373_v8  ;;  %501 = vmatpush.msrb.mxu0 %v432_v17  ;;  %v404_v51 = vld [vmem:[#allocation11 + $0x220] sm:$0xff]  ;;  %v405_v52 = vld [vmem:[#allocation11 + $0x228] sm:$0xff]  ;;  %v379_v6 = vld [vmem:[#allocation11 + $0x158] sm:$0xff] }
  0x60   :  { %540 = vmatpush.msrb.mxu2 %v437_v14  ;;  %488 = vmatpush.msra.mxu3 %v340_v40  ;;  %v400_v55 = vld [vmem:[#allocation11 + $0x200] sm:$0xff]  ;;  %v401_v56 = vld [vmem:[#allocation11 + $0x208] sm:$0xff]  ;;  %v451_v8 = vld [vmem:[#allocation11 + $0x398] sm:$0xff] }
  0x61   :  { %521 = vmatpush.msrb.mxu1 %v369_v12  ;;  %502 = vmatpush.msrb.mxu0 %v428_v21  ;;  %v374_v9 = vld [vmem:[#allocation11 + $0x130] sm:$0xff]  ;;  %v375_v10 = vld [vmem:[#allocation11 + $0x138] sm:$0xff] }
  0x62   :  { %541 = vmatpush.msrb.mxu2 %v433_v18  ;;  %489 = vmatpush.msra.mxu3 %v336_v46  ;;  %v447_v12 = vld [vmem:[#allocation11 + $0x378] sm:$0xff]  ;;  %v370_v13 = vld [vmem:[#allocation11 + $0x110] sm:$0xff] }
  0x63   :  { %522 = vmatpush.msrb.mxu1 %v365_v16  ;;  %503 = vmatpush.msrb.mxu0 %v424_v25  ;;  %v371_v14 = vld [vmem:[#allocation11 + $0x118] sm:$0xff]  ;;  %v442_v15 = vld [vmem:[#allocation11 + $0x350] sm:$0xff] }
  0x64   :  { %542 = vmatpush.msrb.mxu2 %v429_v22  ;;  %554 = vmatpush.msrb.mxu3 %v398_v49  ;;  %v443_v16 = vld [vmem:[#allocation11 + $0x358] sm:$0xff]  ;;  %v366_v17 = vld [vmem:[#allocation11 + $0xf0] sm:$0xff] }
  0x65   :  { %523 = vmatpush.msrb.mxu1 %v361_v20  ;;  %504 = vmatpush.msrb.mxu0 %v420_v29  ;;  %v367_v18 = vld [vmem:[#allocation11 + $0xf8] sm:$0xff]  ;;  %v362_v19 = vld [vmem:[#allocation11 + $0xd0] sm:$0xff] }
  0x66   :  { %543 = vmatpush.msrb.mxu2 %v425_v26  ;;  %555 = vmatpush.msrb.mxu3 %v394_v53  ;;  %v438_v20 = vld [vmem:[#allocation11 + $0x330] sm:$0xff]  ;;  %v363_v21 = vld [vmem:[#allocation11 + $0xd8] sm:$0xff] }
  0x67   :  { %524 = vmatpush.msrb.mxu1 %v357_v24  ;;  %505 = vmatpush.msrb.mxu0 %v416_v33  ;;  %v439_v22 = vld [vmem:[#allocation11 + $0x338] sm:$0xff]  ;;  %v358_v23 = vld [vmem:[#allocation11 + $0xb0] sm:$0xff] }
  0x68   :  { %544 = vmatpush.msrb.mxu2 %v421_v30  ;;  %556 = vmatpush.msrb.mxu3 %v390_v57  ;;  %v434_v24 = vld [vmem:[#allocation11 + $0x310] sm:$0xff]  ;;  %v359_v25 = vld [vmem:[#allocation11 + $0xb8] sm:$0xff] }
  0x69   :  { %525 = vmatpush.msrb.mxu1 %v353_v28  ;;  %506 = vmatpush.msrb.mxu0 %v412_v38  ;;  %v435_v26 = vld [vmem:[#allocation11 + $0x318] sm:$0xff]  ;;  %v354_v27 = vld [vmem:[#allocation11 + $0x90] sm:$0xff] }
  0x6a   :  { %545 = vmatpush.msrb.mxu2 %v417_v34  ;;  %557 = vmatpush.msrb.mxu3 %v386_v61  ;;  %v430_v28 = vld [vmem:[#allocation11 + $0x2f0] sm:$0xff]  ;;  %v355_v29 = vld [vmem:[#allocation11 + $0x98] sm:$0xff]  ;;  %v694_v61 = vld [vmem:[#allocation13 + $0x1c0] sm:$0xff] }
  0x6b   :  { %526 = vmatpush.msrb.mxu1 %v349_v32  ;;  %507 = vmatpush.msrb.mxu0 %v408_v43  ;;  %v431_v30 = vld [vmem:[#allocation11 + $0x2f8] sm:$0xff]  ;;  %v350_v31 = vld [vmem:[#allocation11 + $0x70] sm:$0xff] }
  0x6c   :  { %546 = vmatpush.msrb.mxu2 %v413_v39  ;;  %558 = vmatpush.msrb.mxu3 %v382_v1  ;;  %v426_v32 = vld [vmem:[#allocation11 + $0x2d0] sm:$0xff]  ;;  %v351_v33 = vld [vmem:[#allocation11 + $0x78] sm:$0xff]  ;;  %v690_v1 = vld [vmem:[#allocation13 + $0x1a0] sm:$0xff] }
  0x6d   :  { %527 = vmatpush.msrb.mxu1 %v345_v37  ;;  %508 = vmatpush.msrb.mxu0 %v404_v51  ;;  %v427_v34 = vld [vmem:[#allocation11 + $0x2d8] sm:$0xff]  ;;  %v422_v36 = vld [vmem:[#allocation11 + $0x2b0] sm:$0xff] }
  0x6e   :  { %547 = vmatpush.msrb.mxu2 %v409_v44  ;;  %559 = vmatpush.msrb.mxu3 %v378_v5  ;;  %v347_v37 = vld [vmem:[#allocation11 + $0x58] sm:$0xff]  ;;  %v342_v39 = vld [vmem:[#allocation11 + $0x30] sm:$0xff]  ;;  %v686_v5 = vld [vmem:[#allocation13 + $0x180] sm:$0xff] }
  0x6f   :  { %528 = vmatpush.msrb.mxu1 %v341_v41  ;;  %509 = vmatpush.msrb.mxu0 %v400_v55  ;;  %v423_v38 = vld [vmem:[#allocation11 + $0x2b8] sm:$0xff]  ;;  %v418_v40 = vld [vmem:[#allocation11 + $0x290] sm:$0xff] }
  0x70   :  { %548 = vmatpush.msrb.mxu2 %v405_v52  ;;  %560 = vmatpush.msrb.mxu3 %v374_v9  ;;  %v343_v41 = vld [vmem:[#allocation11 + $0x38] sm:$0xff]  ;;  %v338_v43 = vld [vmem:[#allocation11 + $0x10] sm:$0xff]  ;;  %v814_v9 = vld [vmem:[#allocation13 + $0x580] sm:$0xff] }
  0x71   :  { %529 = vmatpush.msrb.mxu1 %v337_v47  ;;  %574 = vmatpush.msra.mxu0 %v462_v59  ;;  %v414_v44 = vld [vmem:[#allocation11 + $0x270] sm:$0xff]  ;;  %v415_v46 = vld [vmem:[#allocation11 + $0x278] sm:$0xff]  ;;  %v698_v59 = vld [vmem:[#allocation13 + $0x1e0] sm:$0xff] }
  0x72   :  { %549 = vmatpush.msrb.mxu2 %v401_v56  ;;  %561 = vmatpush.msrb.mxu3 %v370_v13  ;;  %v410_v47 = vld [vmem:[#allocation11 + $0x250] sm:$0xff]  ;;  %v403_v52 = vld [vmem:[#allocation11 + $0x218] sm:$0xff]  ;;  %v810_v13 = vld [vmem:[#allocation13 + $0x560] sm:$0xff] }
  0x73   :  { %575 = vmatpush.msra.mxu0 %v458_v63  ;;  %v406_v49 = vld [vmem:[#allocation11 + $0x230] sm:$0xff]  ;;  %v288_v53 = vld [vmem:[#allocation10] sm:$0x3] }
  0x74   :  { %562 = vmatpush.msrb.mxu3 %v366_v17  ;;  %v402_v51 = vld [vmem:[#allocation11 + $0x210] sm:$0xff]  ;;  %v670_v17 = vld [vmem:[#allocation13 + $0x100] sm:$0xff] }
  0x75   :  { %576 = vmatpush.msra.mxu0 %v454_v3 }
  0x76   :  { %563 = vmatpush.msrb.mxu3 %v362_v19  ;;  %v806_v19 = vld [vmem:[#allocation13 + $0x540] sm:$0xff] }
  0x77   :  { %577 = vmatpush.msra.mxu0 %v450_v7  ;;  %v682_v7 = vld [vmem:[#allocation13 + $0x160] sm:$0xff] }
  0x78   :  { %564 = vmatpush.msrb.mxu3 %v358_v23  ;;  %v802_v23 = vld [vmem:[#allocation13 + $0x520] sm:$0xff] }
  0x79   :  { %578 = vmatpush.msra.mxu0 %v446_v11  ;;  %v678_v11 = vld [vmem:[#allocation13 + $0x140] sm:$0xff] }
  0x7a   :  { %565 = vmatpush.msrb.mxu3 %v354_v27  ;;  %v798_v27 = vld [vmem:[#allocation13 + $0x500] sm:$0xff] }
  0x7b   :  { %579 = vmatpush.msra.mxu0 %v442_v15  ;;  %v674_v15 = vld [vmem:[#allocation13 + $0x120] sm:$0xff] }
  0x7c   :  { %566 = vmatpush.msrb.mxu3 %v350_v31  ;;  %v794_v31 = vld [vmem:[#allocation13 + $0x4e0] sm:$0xff] }
  0x7d   :  { %580 = vmatpush.msra.mxu0 %v438_v20  ;;  %v742_v20 = vld [vmem:[#allocation13 + $0x340] sm:$0xff] }
  0x7f   :  { %581 = vmatpush.msra.mxu0 %v434_v24  ;;  %v738_v24 = vld [vmem:[#allocation13 + $0x320] sm:$0xff] }
  0x81   :  { %582 = vmatpush.msra.mxu0 %v430_v28  ;;  %v734_v28 = vld [vmem:[#allocation13 + $0x300] sm:$0xff] }
  0x83   :  { %583 = vmatpush.msra.mxu0 %v426_v32  ;;  %v730_v32 = vld [vmem:[#allocation13 + $0x2e0] sm:$0xff] }
  0x85   :  { %584 = vmatpush.msra.mxu0 %v422_v36  ;;  %v726_v36 = vld [vmem:[#allocation13 + $0x2c0] sm:$0xff] }
  0x87   :  { %585 = vmatpush.msra.mxu0 %v418_v40  ;;  %v722_v40 = vld [vmem:[#allocation13 + $0x2a0] sm:$0xff] }
  0x89   :  { %586 = vmatpush.msra.mxu0 %v414_v44  ;;  %v718_v44 = vld [vmem:[#allocation13 + $0x280] sm:$0xff] }
  0x8b   :  { %587 = vmatpush.msra.mxu0 %v410_v47  ;;  %v778_v47 = vld [vmem:[#allocation13 + $0x460] sm:$0xff] }
  0x8d   :  { %588 = vmatpush.msra.mxu0 %v406_v49  ;;  %v638_v49 = vld [vmem:[#allocation13] sm:$0xff] }
  0x8f   :  { %589 = vmatpush.msra.mxu0 %v402_v51  ;;  %v850_v51 = vld [vmem:[#allocation13 + $0x6a0] sm:$0xff] }
  0xcd   :  { %v252_v42 = vpop.f32.mrf.mxu0 }
  0xce   :  { %v253_v45 = vadd.f32 %v1682_v35, %v252_v42  ;;  %v346_v35 = vld [vmem:[#allocation11 + $0x50] sm:$0xff]  ;;  %v419_v42 = vld [vmem:[#allocation11 + $0x298] sm:$0xff] }
  0xcf   :  { %567 = vmatpush.msrb.mxu3 %v346_v35  ;;  %v790_v35 = vld [vmem:[#allocation13 + $0x4c0] sm:$0xff] }
  0xd0   :  { %v255_v48 = vmax.f32 %v253_v45, 0.0  ;;  %v339_v45 = vld [vmem:[#allocation11 + $0x18] sm:$0xff] }
  0xd1   :  { %568 = vmatpush.msrb.mxu3 %v342_v39  ;;  %v786_v39 = vld [vmem:[#allocation13 + $0x4a0] sm:$0xff] }
  0xd2   :  { %310 = vmatmul.f32.vlgmr.msra.gmra.mxu1 %v255_v48  ;;  %330 = vmatmul.f32.vlgmr.msra.gmra.mxu2 %v255_v48  ;;  %v411_v48 = vld [vmem:[#allocation11 + $0x258] sm:$0xff] }
  0xd3   :  { %594 = vmatpush.msra.mxu1 %v399_v50  ;;  %614 = vmatpush.msra.mxu2 %v463_v60  ;;  %v407_v50 = vld [vmem:[#allocation11 + $0x238] sm:$0xff]  ;;  %v826_v60 = vld [vmem:[#allocation13 + $0x5e0] sm:$0xff] }
  0xd4   :  { %569 = vmatpush.msrb.mxu3 %v338_v43  ;;  %v782_v43 = vld [vmem:[#allocation13 + $0x480] sm:$0xff] }
  0xd5   :  { %595 = vmatpush.msra.mxu1 %v395_v54  ;;  %615 = vmatpush.msra.mxu2 %v459_v0  ;;  %v290_v54 = vperm.slane %v288_v53, 0 }
  0xd7   :  { %596 = vmatpush.msra.mxu1 %v391_v58  ;;  %616 = vmatpush.msra.mxu2 %v455_v4  ;;  %v291_v58 = vperm.slane %v288_v53, 1  ;;  %v762_v4 = vld [vmem:[#allocation13 + $0x3e0] sm:$0xff] }
  0xd8   :  { %v774_v53 = vld [vmem:[#allocation13 + $0x440] sm:$0xff] }
  0xd9   :  { %597 = vmatpush.msra.mxu1 %v387_v62  ;;  %617 = vmatpush.msra.mxu2 %v451_v8  ;;  %v822_v62 = vld [vmem:[#allocation13 + $0x5c0] sm:$0xff] }
  0xda   :  { %v890_v8 = vld [vmem:[#allocation13 + $0x7e0] sm:$0xff] }
  0xdb   :  { %598 = vmatpush.msra.mxu1 %v383_v2  ;;  %618 = vmatpush.msra.mxu2 %v447_v12  ;;  %v818_v2 = vld [vmem:[#allocation13 + $0x5a0] sm:$0xff] }
  0xdc   :  { %v886_v12 = vld [vmem:[#allocation13 + $0x7c0] sm:$0xff] }
  0xdd   :  { %599 = vmatpush.msra.mxu1 %v379_v6  ;;  %619 = vmatpush.msra.mxu2 %v443_v16  ;;  %v758_v6 = vld [vmem:[#allocation13 + $0x3c0] sm:$0xff] }
  0xde   :  { %v746_v16 = vld [vmem:[#allocation13 + $0x360] sm:$0xff] }
  0xdf   :  { %600 = vmatpush.msra.mxu1 %v375_v10  ;;  %620 = vmatpush.msra.mxu2 %v439_v22  ;;  %v754_v10 = vld [vmem:[#allocation13 + $0x3a0] sm:$0xff] }
  0xe0   :  { %v878_v22 = vld [vmem:[#allocation13 + $0x780] sm:$0xff] }
  0xe1   :  { %601 = vmatpush.msra.mxu1 %v371_v14  ;;  %621 = vmatpush.msra.mxu2 %v435_v26  ;;  %v750_v14 = vld [vmem:[#allocation13 + $0x380] sm:$0xff] }
  0xe2   :  { %v874_v26 = vld [vmem:[#allocation13 + $0x760] sm:$0xff] }
  0xe3   :  { %602 = vmatpush.msra.mxu1 %v367_v18  ;;  %622 = vmatpush.msra.mxu2 %v431_v30  ;;  %v882_v18 = vld [vmem:[#allocation13 + $0x7a0] sm:$0xff] }
  0xe4   :  { %v870_v30 = vld [vmem:[#allocation13 + $0x740] sm:$0xff] }
  0xe5   :  { %603 = vmatpush.msra.mxu1 %v363_v21  ;;  %623 = vmatpush.msra.mxu2 %v427_v34  ;;  %v666_v21 = vld [vmem:[#allocation13 + $0xe0] sm:$0xff] }
  0xe6   :  { %v866_v34 = vld [vmem:[#allocation13 + $0x720] sm:$0xff] }
  0xe7   :  { %604 = vmatpush.msra.mxu1 %v359_v25  ;;  %624 = vmatpush.msra.mxu2 %v423_v38  ;;  %v662_v25 = vld [vmem:[#allocation13 + $0xc0] sm:$0xff] }
  0xe8   :  { %v862_v38 = vld [vmem:[#allocation13 + $0x700] sm:$0xff] }
  0xe9   :  { %605 = vmatpush.msra.mxu1 %v355_v29  ;;  %625 = vmatpush.msra.mxu2 %v419_v42  ;;  %v658_v29 = vld [vmem:[#allocation13 + $0xa0] sm:$0xff] }
  0xea   :  { %v858_v42 = vld [vmem:[#allocation13 + $0x6e0] sm:$0xff] }
  0xeb   :  { %606 = vmatpush.msra.mxu1 %v351_v33  ;;  %626 = vmatpush.msra.mxu2 %v415_v46  ;;  %v654_v33 = vld [vmem:[#allocation13 + $0x80] sm:$0xff] }
  0xec   :  { %v854_v46 = vld [vmem:[#allocation13 + $0x6c0] sm:$0xff] }
  0xed   :  { %607 = vmatpush.msra.mxu1 %v347_v37  ;;  %627 = vmatpush.msra.mxu2 %v411_v48  ;;  %v650_v37 = vld [vmem:[#allocation13 + $0x60] sm:$0xff] }
  0xee   :  { %v714_v48 = vld [vmem:[#allocation13 + $0x260] sm:$0xff] }
  0xef   :  { %608 = vmatpush.msra.mxu1 %v343_v41  ;;  %628 = vmatpush.msra.mxu2 %v407_v50  ;;  %v646_v41 = vld [vmem:[#allocation13 + $0x40] sm:$0xff]  ;;  %v699_v50 = vld [vmem:[#allocation13 + $0x1e8] sm:$0xff] }
  0xf1   :  { %609 = vmatpush.msra.mxu1 %v339_v45  ;;  %629 = vmatpush.msra.mxu2 %v403_v52  ;;  %v642_v45 = vld [vmem:[#allocation13 + $0x20] sm:$0xff] }
  0xf2   :  { %v710_v52 = vld [vmem:[#allocation13 + $0x240] sm:$0xff] }
 0x14f   :  { %v311_v55 = vpop.f32.mrf.mxu1 }
 0x150   :  { %v312_v56 = vadd.f32 %v311_v55, %v290_v54  ;;  %v695_v54 = vld [vmem:[#allocation13 + $0x1c8] sm:$0xff]  ;;  %v846_v55 = vld [vmem:[#allocation13 + $0x680] sm:$0xff] }
 0x152   :  { %v334_v57 = vmax.f32 %v312_v56, 0.0  ;;  %v706_v56 = vld [vmem:[#allocation13 + $0x220] sm:$0xff] }
 0x154   :  { %490 = vmatmul.f32.vlgmr.msra.gmra.mxu3 %v334_v57  ;;  %530 = vmatmul.f32.vlgmr.msrb.gmra.mxu1 %v334_v57 }
 0x155   :  { %v331_v63 = vpop.f32.mrf.mxu2  ;;  %904 = vmatpush.msra.mxu3 %v698_v59  ;;  %944 = vmatpush.msrb.mxu1 %v826_v60  ;;  %v842_v59 = vld [vmem:[#allocation13 + $0x660] sm:$0xff] }
 0x156   :  { %v332_v0 = vadd.f32 %v331_v63, %v291_v58  ;;  %v691_v58 = vld [vmem:[#allocation13 + $0x1a8] sm:$0xff]  ;;  %v702_v60 = vld [vmem:[#allocation13 + $0x200] sm:$0xff] }
 0x157   :  { %905 = vmatpush.msra.mxu3 %v694_v61  ;;  %945 = vmatpush.msrb.mxu1 %v822_v62  ;;  %v766_v61 = vld [vmem:[#allocation13 + $0x400] sm:$0xff]  ;;  %v763_v62 = vld [vmem:[#allocation13 + $0x3e8] sm:$0xff] }
 0x158   :  { %v335_v3 = vmax.f32 %v332_v0, 0.0  ;;  %v687_v63 = vld [vmem:[#allocation13 + $0x188] sm:$0xff]  ;;  %v838_v0 = vld [vmem:[#allocation13 + $0x640] sm:$0xff] }
 0x159   :  { %906 = vmatpush.msra.mxu3 %v690_v1  ;;  %946 = vmatpush.msrb.mxu1 %v818_v2  ;;  %v827_v1 = vld [vmem:[#allocation13 + $0x5e8] sm:$0xff] }
 0x15a   :  { %510 = vmatmul.f32.vlgmr.msrb.gmra.mxu0 %v335_v3  ;;  %550 = vmatmul.f32.vlgmr.msrb.gmra.mxu2 %v335_v3  ;;  %v759_v2 = vld [vmem:[#allocation13 + $0x3c8] sm:$0xff] }
 0x15b   :  { %924 = vmatpush.msrb.mxu0 %v762_v4  ;;  %907 = vmatpush.msra.mxu3 %v686_v5  ;;  %v834_v4 = vld [vmem:[#allocation13 + $0x620] sm:$0xff]  ;;  %v823_v5 = vld [vmem:[#allocation13 + $0x5c8] sm:$0xff] }
 0x15c   :  { %570 = vmatmul.f32.vlgmr.msrb.gmra.mxu3 %v334_v57  ;;  %610 = vmatmul.f32.vlgmr.msra.gmra.mxu1 %v334_v57  ;;  %v770_v57 = vld [vmem:[#allocation13 + $0x420] sm:$0xff] }
 0x15d   :  { %925 = vmatpush.msrb.mxu0 %v758_v6  ;;  %908 = vmatpush.msra.mxu3 %v682_v7  ;;  %v755_v6 = vld [vmem:[#allocation13 + $0x3a8] sm:$0xff] }
 0x15e   :  { %964 = vmatpush.msrb.mxu2 %v890_v8  ;;  %947 = vmatpush.msrb.mxu1 %v814_v9  ;;  %v679_v7 = vld [vmem:[#allocation13 + $0x148] sm:$0xff]  ;;  %v830_v8 = vld [vmem:[#allocation13 + $0x600] sm:$0xff] }
 0x15f   :  { %926 = vmatpush.msrb.mxu0 %v754_v10  ;;  %909 = vmatpush.msra.mxu3 %v678_v11  ;;  %v819_v9 = vld [vmem:[#allocation13 + $0x5a8] sm:$0xff] }
 0x160   :  { %965 = vmatpush.msrb.mxu2 %v886_v12  ;;  %948 = vmatpush.msrb.mxu1 %v810_v13  ;;  %v751_v10 = vld [vmem:[#allocation13 + $0x388] sm:$0xff] }
 0x161   :  { %927 = vmatpush.msrb.mxu0 %v750_v14  ;;  %910 = vmatpush.msra.mxu3 %v674_v15  ;;  %v675_v11 = vld [vmem:[#allocation13 + $0x128] sm:$0xff] }
 0x162   :  { %590 = vmatmul.f32.vlgmr.msra.gmra.mxu0 %v335_v3  ;;  %630 = vmatmul.f32.vlgmr.msra.gmra.mxu2 %v335_v3  ;;  %v683_v3 = vld [vmem:[#allocation13 + $0x168] sm:$0xff] }
 0x163   :  { %928 = vmatpush.msrb.mxu0 %v746_v16  ;;  %911 = vmatpush.msra.mxu3 %v670_v17  ;;  %v891_v12 = vld [vmem:[#allocation13 + $0x7e8] sm:$0xff] }
 0x164   :  { %966 = vmatpush.msrb.mxu2 %v882_v18  ;;  %949 = vmatpush.msrb.mxu1 %v806_v19  ;;  %v815_v13 = vld [vmem:[#allocation13 + $0x588] sm:$0xff] }
 0x165   :  { %929 = vmatpush.msrb.mxu0 %v742_v20  ;;  %912 = vmatpush.msra.mxu3 %v666_v21  ;;  %v747_v14 = vld [vmem:[#allocation13 + $0x368] sm:$0xff] }
 0x166   :  { %967 = vmatpush.msrb.mxu2 %v878_v22  ;;  %950 = vmatpush.msrb.mxu1 %v802_v23  ;;  %v671_v15 = vld [vmem:[#allocation13 + $0x108] sm:$0xff] }
 0x167   :  { %930 = vmatpush.msrb.mxu0 %v738_v24  ;;  %913 = vmatpush.msra.mxu3 %v662_v25  ;;  %v887_v16 = vld [vmem:[#allocation13 + $0x7c8] sm:$0xff] }
 0x168   :  { %968 = vmatpush.msrb.mxu2 %v874_v26  ;;  %951 = vmatpush.msrb.mxu1 %v798_v27  ;;  %v811_v17 = vld [vmem:[#allocation13 + $0x568] sm:$0xff] }
 0x169   :  { %931 = vmatpush.msrb.mxu0 %v734_v28  ;;  %914 = vmatpush.msra.mxu3 %v658_v29  ;;  %v743_v18 = vld [vmem:[#allocation13 + $0x348] sm:$0xff] }
 0x16a   :  { %969 = vmatpush.msrb.mxu2 %v870_v30  ;;  %952 = vmatpush.msrb.mxu1 %v794_v31  ;;  %v667_v19 = vld [vmem:[#allocation13 + $0xe8] sm:$0xff] }
 0x16b   :  { %932 = vmatpush.msrb.mxu0 %v730_v32  ;;  %915 = vmatpush.msra.mxu3 %v654_v33  ;;  %v883_v20 = vld [vmem:[#allocation13 + $0x7a8] sm:$0xff] }
 0x16c   :  { %970 = vmatpush.msrb.mxu2 %v866_v34  ;;  %953 = vmatpush.msrb.mxu1 %v790_v35  ;;  %v739_v21 = vld [vmem:[#allocation13 + $0x328] sm:$0xff] }
 0x16d   :  { %933 = vmatpush.msrb.mxu0 %v726_v36  ;;  %916 = vmatpush.msra.mxu3 %v650_v37  ;;  %v663_v22 = vld [vmem:[#allocation13 + $0xc8] sm:$0xff] }
 0x16e   :  { %971 = vmatpush.msrb.mxu2 %v862_v38  ;;  %954 = vmatpush.msrb.mxu1 %v786_v39  ;;  %v735_v23 = vld [vmem:[#allocation13 + $0x308] sm:$0xff] }
 0x16f   :  { %934 = vmatpush.msrb.mxu0 %v722_v40  ;;  %917 = vmatpush.msra.mxu3 %v646_v41  ;;  %v807_v24 = vld [vmem:[#allocation13 + $0x548] sm:$0xff] }
 0x170   :  { %972 = vmatpush.msrb.mxu2 %v858_v42  ;;  %955 = vmatpush.msrb.mxu1 %v782_v43  ;;  %v879_v25 = vld [vmem:[#allocation13 + $0x788] sm:$0xff] }
 0x171   :  { %935 = vmatpush.msrb.mxu0 %v718_v44  ;;  %918 = vmatpush.msra.mxu3 %v642_v45  ;;  %v659_v26 = vld [vmem:[#allocation13 + $0xa8] sm:$0xff] }
 0x172   :  { %973 = vmatpush.msrb.mxu2 %v854_v46  ;;  %956 = vmatpush.msrb.mxu1 %v778_v47  ;;  %v731_v27 = vld [vmem:[#allocation13 + $0x2e8] sm:$0xff] }
 0x173   :  { %936 = vmatpush.msrb.mxu0 %v714_v48  ;;  %919 = vmatpush.msra.mxu3 %v638_v49  ;;  %v803_v28 = vld [vmem:[#allocation13 + $0x528] sm:$0xff] }
 0x174   :  { %974 = vmatpush.msrb.mxu2 %v850_v51  ;;  %957 = vmatpush.msrb.mxu1 %v774_v53  ;;  %v875_v29 = vld [vmem:[#allocation13 + $0x768] sm:$0xff] }
 0x175   :  { %984 = vmatpush.msrb.mxu3 %v699_v50  ;;  %937 = vmatpush.msrb.mxu0 %v710_v52  ;;  %v655_v30 = vld [vmem:[#allocation13 + $0x88] sm:$0xff] }
 0x176   :  { %975 = vmatpush.msrb.mxu2 %v846_v55  ;;  %958 = vmatpush.msrb.mxu1 %v770_v57  ;;  %v727_v31 = vld [vmem:[#allocation13 + $0x2c8] sm:$0xff] }
 0x177   :  { %985 = vmatpush.msrb.mxu3 %v695_v54  ;;  %938 = vmatpush.msrb.mxu0 %v706_v56  ;;  %v799_v32 = vld [vmem:[#allocation13 + $0x508] sm:$0xff] }
 0x178   :  { %976 = vmatpush.msrb.mxu2 %v842_v59  ;;  %959 = vmatpush.msrb.mxu1 %v766_v61  ;;  %v871_v33 = vld [vmem:[#allocation13 + $0x748] sm:$0xff] }
 0x179   :  { %986 = vmatpush.msrb.mxu3 %v691_v58  ;;  %939 = vmatpush.msrb.mxu0 %v702_v60  ;;  %v651_v34 = vld [vmem:[#allocation13 + $0x68] sm:$0xff] }
 0x17a   :  { %977 = vmatpush.msrb.mxu2 %v838_v0  ;;  %1024 = vmatpush.msra.mxu1 %v827_v1  ;;  %v723_v35 = vld [vmem:[#allocation13 + $0x2a8] sm:$0xff] }
 0x17b   :  { %1004 = vmatpush.msra.mxu0 %v763_v62  ;;  %987 = vmatpush.msrb.mxu3 %v687_v63  ;;  %v795_v36 = vld [vmem:[#allocation13 + $0x4e8] sm:$0xff]  ;;  %v464_v62 = vld [vmem:[%s2190_s6] sm:$0xf] }
 0x17c   :  { %978 = vmatpush.msrb.mxu2 %v834_v4  ;;  %1025 = vmatpush.msra.mxu1 %v823_v5  ;;  %v867_v37 = vld [vmem:[#allocation13 + $0x728] sm:$0xff]  ;;  %v466_v63 = vperm.slane %v464_v62, 0 }
 0x17d   :  { %1005 = vmatpush.msra.mxu0 %v759_v2  ;;  %988 = vmatpush.msrb.mxu3 %v683_v3  ;;  %v647_v38 = vld [vmem:[#allocation13 + $0x48] sm:$0xff]  ;;  %v467_v3 = vperm.slane %v464_v62, 1 }
 0x17e   :  { %979 = vmatpush.msrb.mxu2 %v830_v8  ;;  %1026 = vmatpush.msra.mxu1 %v819_v9  ;;  %v719_v39 = vld [vmem:[#allocation13 + $0x288] sm:$0xff]  ;;  %v700_v8 = vld [vmem:[#allocation13 + $0x1f0] sm:$0xff]  ;;  %v468_v9 = vperm.slane %v464_v62, 2 }
 0x17f   :  { %1006 = vmatpush.msra.mxu0 %v755_v6  ;;  %989 = vmatpush.msrb.mxu3 %v679_v7  ;;  %v791_v40 = vld [vmem:[#allocation13 + $0x4c8] sm:$0xff] }
 0x180   :  { %1044 = vmatpush.msra.mxu2 %v891_v12  ;;  %1027 = vmatpush.msra.mxu1 %v815_v13  ;;  %v863_v41 = vld [vmem:[#allocation13 + $0x708] sm:$0xff]  ;;  %v696_v12 = vld [vmem:[#allocation13 + $0x1d0] sm:$0xff] }
 0x181   :  { %1007 = vmatpush.msra.mxu0 %v751_v10  ;;  %990 = vmatpush.msrb.mxu3 %v675_v11  ;;  %v643_v42 = vld [vmem:[#allocation13 + $0x28] sm:$0xff] }
 0x182   :  { %1045 = vmatpush.msra.mxu2 %v887_v16  ;;  %1028 = vmatpush.msra.mxu1 %v811_v17  ;;  %v715_v43 = vld [vmem:[#allocation13 + $0x268] sm:$0xff]  ;;  %v692_v17 = vld [vmem:[#allocation13 + $0x1b0] sm:$0xff] }
 0x183   :  { %1008 = vmatpush.msra.mxu0 %v747_v14  ;;  %991 = vmatpush.msrb.mxu3 %v671_v15  ;;  %v787_v44 = vld [vmem:[#allocation13 + $0x4a8] sm:$0xff]  ;;  %v469_v14 = vperm.slane %v464_v62, 3  ;;  %v868_v62 = vld [vmem:[#allocation13 + $0x730] sm:$0xff] }
 0x184   :  { %1046 = vmatpush.msra.mxu2 %v883_v20  ;;  %1029 = vmatpush.msra.mxu1 %v807_v24  ;;  %v859_v45 = vld [vmem:[#allocation13 + $0x6e8] sm:$0xff] }
 0x185   :  { %1009 = vmatpush.msra.mxu0 %v743_v18  ;;  %992 = vmatpush.msrb.mxu3 %v667_v19  ;;  %v639_v46 = vld [vmem:[#allocation13 + $0x8] sm:$0xff]  ;;  %v764_v18 = vld [vmem:[#allocation13 + $0x3f0] sm:$0xff] }
 0x186   :  { %1047 = vmatpush.msra.mxu2 %v879_v25  ;;  %1030 = vmatpush.msra.mxu1 %v803_v28  ;;  %v711_v47 = vld [vmem:[#allocation13 + $0x248] sm:$0xff] }
 0x187   :  { %1010 = vmatpush.msra.mxu0 %v739_v21  ;;  %993 = vmatpush.msrb.mxu3 %v663_v22  ;;  %v783_v48 = vld [vmem:[#allocation13 + $0x488] sm:$0xff]  ;;  %v688_v22 = vld [vmem:[#allocation13 + $0x190] sm:$0xff] }
 0x188   :  { %1048 = vmatpush.msra.mxu2 %v875_v29  ;;  %1031 = vmatpush.msra.mxu1 %v799_v32  ;;  %v855_v49 = vld [vmem:[#allocation13 + $0x6c8] sm:$0xff]  ;;  %v828_v29 = vld [vmem:[#allocation13 + $0x5f0] sm:$0xff] }
 0x189   :  { %1011 = vmatpush.msra.mxu0 %v735_v23  ;;  %994 = vmatpush.msrb.mxu3 %v659_v26  ;;  %v707_v50 = vld [vmem:[#allocation13 + $0x228] sm:$0xff]  ;;  %v760_v23 = vld [vmem:[#allocation13 + $0x3d0] sm:$0xff] }
 0x18a   :  { %1049 = vmatpush.msra.mxu2 %v871_v33  ;;  %1032 = vmatpush.msra.mxu1 %v795_v36  ;;  %v779_v51 = vld [vmem:[#allocation13 + $0x468] sm:$0xff]  ;;  %v684_v26 = vld [vmem:[#allocation13 + $0x170] sm:$0xff] }
 0x18b   :  { %1012 = vmatpush.msra.mxu0 %v731_v27  ;;  %995 = vmatpush.msrb.mxu3 %v655_v30  ;;  %v851_v52 = vld [vmem:[#allocation13 + $0x6a8] sm:$0xff]  ;;  %v756_v27 = vld [vmem:[#allocation13 + $0x3b0] sm:$0xff] }
 0x18c   :  { %1050 = vmatpush.msra.mxu2 %v867_v37  ;;  %1033 = vmatpush.msra.mxu1 %v791_v40  ;;  %v703_v53 = vld [vmem:[#allocation13 + $0x208] sm:$0xff]  ;;  %v752_v32 = vld [vmem:[#allocation13 + $0x390] sm:$0xff] }
 0x18d   :  { %1013 = vmatpush.msra.mxu0 %v727_v31  ;;  %996 = vmatpush.msrb.mxu3 %v651_v34  ;;  %v775_v54 = vld [vmem:[#allocation13 + $0x448] sm:$0xff]  ;;  %v680_v31 = vld [vmem:[#allocation13 + $0x150] sm:$0xff] }
 0x18e   :  { %1051 = vmatpush.msra.mxu2 %v863_v41  ;;  %1034 = vmatpush.msra.mxu1 %v787_v44  ;;  %v847_v55 = vld [vmem:[#allocation13 + $0x688] sm:$0xff]  ;;  %v824_v33 = vld [vmem:[#allocation13 + $0x5d0] sm:$0xff] }
 0x18f   :  { %1014 = vmatpush.msra.mxu0 %v723_v35  ;;  %997 = vmatpush.msrb.mxu3 %v647_v38  ;;  %v771_v56 = vld [vmem:[#allocation13 + $0x428] sm:$0xff]  ;;  %v676_v35 = vld [vmem:[#allocation13 + $0x130] sm:$0xff] }
 0x190   :  { %1052 = vmatpush.msra.mxu2 %v859_v45  ;;  %1035 = vmatpush.msra.mxu1 %v783_v48  ;;  %v843_v57 = vld [vmem:[#allocation13 + $0x668] sm:$0xff]  ;;  %v748_v36 = vld [vmem:[#allocation13 + $0x370] sm:$0xff] }
 0x191   :  { %1015 = vmatpush.msra.mxu0 %v719_v39  ;;  %998 = vmatpush.msrb.mxu3 %v643_v42  ;;  %v767_v58 = vld [vmem:[#allocation13 + $0x408] sm:$0xff]  ;;  %v820_v37 = vld [vmem:[#allocation13 + $0x5b0] sm:$0xff] }
 0x192   :  { %1053 = vmatpush.msra.mxu2 %v855_v49  ;;  %1036 = vmatpush.msra.mxu1 %v779_v51  ;;  %v839_v59 = vld [vmem:[#allocation13 + $0x648] sm:$0xff]  ;;  %v892_v38 = vld [vmem:[#allocation13 + $0x7f0] sm:$0xff] }
 0x193   :  { %1016 = vmatpush.msra.mxu0 %v715_v43  ;;  %999 = vmatpush.msrb.mxu3 %v639_v46  ;;  %v835_v60 = vld [vmem:[#allocation13 + $0x628] sm:$0xff]  ;;  %v672_v39 = vld [vmem:[#allocation13 + $0x110] sm:$0xff] }
 0x194   :  { %1054 = vmatpush.msra.mxu2 %v851_v52  ;;  %1037 = vmatpush.msra.mxu1 %v775_v54  ;;  %v831_v61 = vld [vmem:[#allocation13 + $0x608] sm:$0xff]  ;;  %v744_v40 = vld [vmem:[#allocation13 + $0x350] sm:$0xff] }
 0x195   :  { %1017 = vmatpush.msra.mxu0 %v711_v47  ;;  %v816_v41 = vld [vmem:[#allocation13 + $0x590] sm:$0xff] }
 0x196   :  { %1055 = vmatpush.msra.mxu2 %v847_v55  ;;  %1038 = vmatpush.msra.mxu1 %v771_v56  ;;  %v888_v42 = vld [vmem:[#allocation13 + $0x7d0] sm:$0xff] }
 0x197   :  { %1018 = vmatpush.msra.mxu0 %v707_v50  ;;  %v668_v43 = vld [vmem:[#allocation13 + $0xf0] sm:$0xff] }
 0x198   :  { %1056 = vmatpush.msra.mxu2 %v843_v57  ;;  %1039 = vmatpush.msra.mxu1 %v767_v58  ;;  %v740_v44 = vld [vmem:[#allocation13 + $0x330] sm:$0xff] }
 0x199   :  { %1019 = vmatpush.msra.mxu0 %v703_v53  ;;  %v812_v45 = vld [vmem:[#allocation13 + $0x570] sm:$0xff] }
 0x19a   :  { %1057 = vmatpush.msra.mxu2 %v839_v59  ;;  %v884_v46 = vld [vmem:[#allocation13 + $0x7b0] sm:$0xff] }
 0x19b   :  { %v664_v47 = vld [vmem:[#allocation13 + $0xd0] sm:$0xff] }
 0x19c   :  { %1058 = vmatpush.msra.mxu2 %v835_v60  ;;  %v736_v48 = vld [vmem:[#allocation13 + $0x310] sm:$0xff] }
 0x19d   :  { %v808_v49 = vld [vmem:[#allocation13 + $0x550] sm:$0xff] }
 0x19e   :  { %1059 = vmatpush.msra.mxu2 %v831_v61  ;;  %v880_v50 = vld [vmem:[#allocation13 + $0x790] sm:$0xff] }
 0x19f   :  { %v660_v51 = vld [vmem:[#allocation13 + $0xb0] sm:$0xff] }
 0x1a0   :  { %v732_v52 = vld [vmem:[#allocation13 + $0x2f0] sm:$0xff] }
 0x1a1   :  { %v804_v53 = vld [vmem:[#allocation13 + $0x530] sm:$0xff] }
 0x1a2   :  { %v876_v54 = vld [vmem:[#allocation13 + $0x770] sm:$0xff] }
 0x1a3   :  { %v656_v55 = vld [vmem:[#allocation13 + $0x90] sm:$0xff] }
 0x1a4   :  { %v728_v56 = vld [vmem:[#allocation13 + $0x2d0] sm:$0xff] }
 0x1a5   :  { %v800_v57 = vld [vmem:[#allocation13 + $0x510] sm:$0xff] }
 0x1a6   :  { %v872_v58 = vld [vmem:[#allocation13 + $0x750] sm:$0xff] }
 0x1a7   :  { %v652_v59 = vld [vmem:[#allocation13 + $0x70] sm:$0xff] }
 0x1a8   :  { %v724_v60 = vld [vmem:[#allocation13 + $0x2b0] sm:$0xff] }
 0x1a9   :  { %v796_v61 = vld [vmem:[#allocation13 + $0x4f0] sm:$0xff] }
 0x1d1   :  { %v531_v0 = vpop.f32.mrf.mxu1 }
 0x1d2   :  { %v532_v6 = vadd.f32 %v531_v0, %v467_v3  ;;  %v720_v0 = vld [vmem:[#allocation13 + $0x290] sm:$0xff] }
 0x1d3   :  { %v644_v3 = vld [vmem:[#allocation13 + $0x30] sm:$0xff] }
 0x1d7   :  { %v491_v1 = vpop.f32.mrf.mxu3  ;;  %v511_v2 = vpop.f32.mrf.mxu0 }
 0x1d8   :  { %v492_v4 = vadd.f32 %v491_v1, %v466_v63  ;;  %v648_v63 = vld [vmem:[#allocation13 + $0x50] sm:$0xff] }
 0x1d9   :  { %v611_v19 = vpop.f32.mrf.mxu1  ;;  %v792_v1 = vld [vmem:[#allocation13 + $0x4d0] sm:$0xff] }
 0x1da   :  { %v512_v5 = vadd.f32 %v511_v2, %v492_v4  ;;  %v612_v24 = vadd.f32 %v611_v19, %v469_v14  ;;  %v864_v2 = vld [vmem:[#allocation13 + $0x710] sm:$0xff] }
 0x1db   :  { %v716_v4 = vld [vmem:[#allocation13 + $0x270] sm:$0xff] }
 0x1dc   :  { %v2142_v7 = vmax.f32 %v512_v5, 0.0  ;;  %v788_v5 = vld [vmem:[#allocation13 + $0x4b0] sm:$0xff] }
 0x1dd   :  { %v551_v10 = vpop.f32.mrf.mxu2  ;;  %v780_v14 = vld [vmem:[#allocation13 + $0x470] sm:$0xff] }
 0x1de   :  { %v552_v11 = vadd.f32 %v551_v10, %v532_v6  ;;  %920 = vmatmul.f32.vlgmr.msra.gmra.mxu3 %v2142_v7  ;;  %v860_v6 = vld [vmem:[#allocation13 + $0x6f0] sm:$0xff] }
 0x1df   :  { %1064 = vmatpush.msra.mxu3 %v700_v8  ;;  %v571_v13 = vpop.f32.mrf.mxu3  ;;  %v591_v20 = vpop.f32.mrf.mxu0  ;;  %v640_v8 = vld [vmem:[#allocation13 + $0x10] sm:$0xff] }
 0x1e0   :  { %v2145_v15 = vmax.f32 %v552_v11, 0.0  ;;  %v572_v16 = vadd.f32 %v571_v13, %v468_v9  ;;  %v712_v9 = vld [vmem:[#allocation13 + $0x250] sm:$0xff] }
 0x1e1   :  { %1065 = vmatpush.msra.mxu3 %v696_v12  ;;  %v784_v10 = vld [vmem:[#allocation13 + $0x490] sm:$0xff]  ;;  %v701_v12 = vld [vmem:[#allocation13 + $0x1f8] sm:$0xff] }
 0x1e2   :  { %v592_v21 = vadd.f32 %v591_v20, %v572_v16  ;;  %940 = vmatmul.f32.vlgmr.msrb.gmra.mxu0 %v2145_v15  ;;  %v856_v11 = vld [vmem:[#allocation13 + $0x6d0] sm:$0xff] }
 0x1e3   :  { %1066 = vmatpush.msra.mxu3 %v692_v17  ;;  %1084 = vmatpush.msrb.mxu0 %v764_v18  ;;  %v708_v13 = vld [vmem:[#allocation13 + $0x230] sm:$0xff]  ;;  %v697_v17 = vld [vmem:[#allocation13 + $0x1d8] sm:$0xff] }
 0x1e4   :  { %v2148_v25 = vmax.f32 %v592_v21, 0.0  ;;  %v852_v16 = vld [vmem:[#allocation13 + $0x6b0] sm:$0xff]  ;;  %v693_v21 = vld [vmem:[#allocation13 + $0x1b8] sm:$0xff] }
 0x1e5   :  { %1067 = vmatpush.msra.mxu3 %v688_v22  ;;  %1085 = vmatpush.msrb.mxu0 %v760_v23  ;;  %v631_v28 = vpop.f32.mrf.mxu2  ;;  %v704_v18 = vld [vmem:[#allocation13 + $0x210] sm:$0xff]  ;;  %v765_v22 = vld [vmem:[#allocation13 + $0x3f8] sm:$0xff] }
 0x1e6   :  { %v632_v30 = vadd.f32 %v631_v28, %v612_v24  ;;  %960 = vmatmul.f32.vlgmr.msrb.gmra.mxu1 %v2148_v25  ;;  %1000 = vmatmul.f32.vlgmr.msrb.gmra.mxu3 %v2142_v7  ;;  %v776_v19 = vld [vmem:[#allocation13 + $0x450] sm:$0xff] }
 0x1e7   :  { %1068 = vmatpush.msra.mxu3 %v684_v26  ;;  %1086 = vmatpush.msrb.mxu0 %v756_v27  ;;  %v848_v20 = vld [vmem:[#allocation13 + $0x690] sm:$0xff]  ;;  %v689_v26 = vld [vmem:[#allocation13 + $0x198] sm:$0xff] }
 0x1e8   :  { %v2152_v34 = vmax.f32 %v632_v30, 0.0  ;;  %1104 = vmatpush.msrb.mxu1 %v828_v29  ;;  %v772_v23 = vld [vmem:[#allocation13 + $0x430] sm:$0xff]  ;;  %v761_v27 = vld [vmem:[#allocation13 + $0x3d8] sm:$0xff] }
 0x1e9   :  { %1069 = vmatpush.msra.mxu3 %v680_v31  ;;  %1087 = vmatpush.msrb.mxu0 %v752_v32  ;;  %v844_v24 = vld [vmem:[#allocation13 + $0x670] sm:$0xff]  ;;  %v685_v30 = vld [vmem:[#allocation13 + $0x178] sm:$0xff] }
 0x1ea   :  { %1105 = vmatpush.msrb.mxu1 %v824_v33  ;;  %980 = vmatmul.f32.vlgmr.msrb.gmra.mxu2 %v2152_v34  ;;  %v768_v28 = vld [vmem:[#allocation13 + $0x410] sm:$0xff]  ;;  %v757_v31 = vld [vmem:[#allocation13 + $0x3b8] sm:$0xff] }
 0x1eb   :  { %1020 = vmatmul.f32.vlgmr.msra.gmra.mxu0 %v2145_v15  ;;  %1070 = vmatpush.msra.mxu3 %v676_v35  ;;  %v840_v29 = vld [vmem:[#allocation13 + $0x650] sm:$0xff]  ;;  %v829_v32 = vld [vmem:[#allocation13 + $0x5f8] sm:$0xff] }
 0x1ec   :  { %1088 = vmatpush.msrb.mxu0 %v748_v36  ;;  %1106 = vmatpush.msrb.mxu1 %v820_v37  ;;  %v836_v33 = vld [vmem:[#allocation13 + $0x630] sm:$0xff]  ;;  %v681_v35 = vld [vmem:[#allocation13 + $0x158] sm:$0xff] }
 0x1ed   :  { %1124 = vmatpush.msrb.mxu2 %v892_v38  ;;  %1071 = vmatpush.msra.mxu3 %v672_v39  ;;  %v753_v36 = vld [vmem:[#allocation13 + $0x398] sm:$0xff]  ;;  %v832_v38 = vld [vmem:[#allocation13 + $0x610] sm:$0xff] }
 0x1ee   :  { %1089 = vmatpush.msrb.mxu0 %v744_v40  ;;  %1107 = vmatpush.msrb.mxu1 %v816_v41  ;;  %v825_v37 = vld [vmem:[#allocation13 + $0x5d8] sm:$0xff] }
 0x1ef   :  { %1125 = vmatpush.msrb.mxu2 %v888_v42  ;;  %1040 = vmatmul.f32.vlgmr.msra.gmra.mxu1 %v2148_v25  ;;  %v677_v39 = vld [vmem:[#allocation13 + $0x138] sm:$0xff] }
 0x1f0   :  { %1072 = vmatpush.msra.mxu3 %v668_v43  ;;  %1090 = vmatpush.msrb.mxu0 %v740_v44  ;;  %v749_v40 = vld [vmem:[#allocation13 + $0x378] sm:$0xff] }
 0x1f1   :  { %1108 = vmatpush.msrb.mxu1 %v812_v45  ;;  %1126 = vmatpush.msrb.mxu2 %v884_v46  ;;  %v821_v41 = vld [vmem:[#allocation13 + $0x5b8] sm:$0xff] }
 0x1f2   :  { %1073 = vmatpush.msra.mxu3 %v664_v47  ;;  %1091 = vmatpush.msrb.mxu0 %v736_v48  ;;  %v893_v42 = vld [vmem:[#allocation13 + $0x7f8] sm:$0xff] }
 0x1f3   :  { %1109 = vmatpush.msrb.mxu1 %v808_v49  ;;  %1127 = vmatpush.msrb.mxu2 %v880_v50  ;;  %v673_v43 = vld [vmem:[#allocation13 + $0x118] sm:$0xff] }
 0x1f4   :  { %1060 = vmatmul.f32.vlgmr.msra.gmra.mxu2 %v2152_v34  ;;  %1074 = vmatpush.msra.mxu3 %v660_v51  ;;  %v745_v44 = vld [vmem:[#allocation13 + $0x358] sm:$0xff] }
 0x1f5   :  { %1092 = vmatpush.msrb.mxu0 %v732_v52  ;;  %1110 = vmatpush.msrb.mxu1 %v804_v53  ;;  %v817_v45 = vld [vmem:[#allocation13 + $0x598] sm:$0xff] }
 0x1f6   :  { %1128 = vmatpush.msrb.mxu2 %v876_v54  ;;  %1075 = vmatpush.msra.mxu3 %v656_v55  ;;  %v889_v46 = vld [vmem:[#allocation13 + $0x7d8] sm:$0xff] }
 0x1f7   :  { %1093 = vmatpush.msrb.mxu0 %v728_v56  ;;  %1111 = vmatpush.msrb.mxu1 %v800_v57  ;;  %v669_v47 = vld [vmem:[#allocation13 + $0xf8] sm:$0xff] }
 0x1f8   :  { %1129 = vmatpush.msrb.mxu2 %v872_v58  ;;  %1076 = vmatpush.msra.mxu3 %v652_v59  ;;  %v741_v48 = vld [vmem:[#allocation13 + $0x338] sm:$0xff] }
 0x1f9   :  { %1094 = vmatpush.msrb.mxu0 %v724_v60  ;;  %1112 = vmatpush.msrb.mxu1 %v796_v61  ;;  %v813_v49 = vld [vmem:[#allocation13 + $0x578] sm:$0xff] }
 0x1fa   :  { %1130 = vmatpush.msrb.mxu2 %v868_v62  ;;  %1077 = vmatpush.msra.mxu3 %v648_v63  ;;  %v885_v50 = vld [vmem:[#allocation13 + $0x7b8] sm:$0xff] }
 0x1fb   :  { %1095 = vmatpush.msrb.mxu0 %v720_v0  ;;  %1113 = vmatpush.msrb.mxu1 %v792_v1  ;;  %v665_v51 = vld [vmem:[#allocation13 + $0xd8] sm:$0xff] }
 0x1fc   :  { %1131 = vmatpush.msrb.mxu2 %v864_v2  ;;  %1078 = vmatpush.msra.mxu3 %v644_v3  ;;  %v737_v52 = vld [vmem:[#allocation13 + $0x318] sm:$0xff] }
 0x1fd   :  { %1096 = vmatpush.msrb.mxu0 %v716_v4  ;;  %1114 = vmatpush.msrb.mxu1 %v788_v5  ;;  %v809_v53 = vld [vmem:[#allocation13 + $0x558] sm:$0xff] }
 0x1fe   :  { %1132 = vmatpush.msrb.mxu2 %v860_v6  ;;  %1079 = vmatpush.msra.mxu3 %v640_v8  ;;  %v881_v54 = vld [vmem:[#allocation13 + $0x798] sm:$0xff] }
 0x1ff   :  { %1097 = vmatpush.msrb.mxu0 %v712_v9  ;;  %1115 = vmatpush.msrb.mxu1 %v784_v10  ;;  %v661_v55 = vld [vmem:[#allocation13 + $0xb8] sm:$0xff] }
 0x200   :  { %1133 = vmatpush.msrb.mxu2 %v856_v11  ;;  %1080 = vmatmul.f32.vlgmr.msra.gmra.mxu3 %v2142_v7  ;;  %v733_v56 = vld [vmem:[#allocation13 + $0x2f8] sm:$0xff] }
 0x201   :  { %1144 = vmatpush.msrb.mxu3 %v701_v12  ;;  %1098 = vmatpush.msrb.mxu0 %v708_v13  ;;  %v805_v57 = vld [vmem:[#allocation13 + $0x538] sm:$0xff] }
 0x202   :  { %1116 = vmatpush.msrb.mxu1 %v780_v14  ;;  %1134 = vmatpush.msrb.mxu2 %v852_v16  ;;  %v877_v58 = vld [vmem:[#allocation13 + $0x778] sm:$0xff] }
 0x203   :  { %1145 = vmatpush.msrb.mxu3 %v697_v17  ;;  %1099 = vmatpush.msrb.mxu0 %v704_v18  ;;  %v657_v59 = vld [vmem:[#allocation13 + $0x98] sm:$0xff] }
 0x204   :  { %1117 = vmatpush.msrb.mxu1 %v776_v19  ;;  %1135 = vmatpush.msrb.mxu2 %v848_v20  ;;  %v729_v60 = vld [vmem:[#allocation13 + $0x2d8] sm:$0xff] }
 0x205   :  { %1100 = vmatmul.f32.vlgmr.msrb.gmra.mxu0 %v2145_v15  ;;  %1146 = vmatpush.msrb.mxu3 %v693_v21  ;;  %v801_v61 = vld [vmem:[#allocation13 + $0x518] sm:$0xff] }
 0x206   :  { %1164 = vmatpush.msra.mxu0 %v765_v22  ;;  %1118 = vmatpush.msrb.mxu1 %v772_v23  ;;  %v873_v62 = vld [vmem:[#allocation13 + $0x758] sm:$0xff] }
 0x207   :  { %1136 = vmatpush.msrb.mxu2 %v844_v24  ;;  %1147 = vmatpush.msrb.mxu3 %v689_v26  ;;  %v653_v63 = vld [vmem:[#allocation13 + $0x78] sm:$0xff]  ;;  %v1256_v26 = vld [vmem:[#allocation16 + $0xe0] sm:$0xff] }
 0x208   :  { %1165 = vmatpush.msra.mxu0 %v761_v27  ;;  %1119 = vmatpush.msrb.mxu1 %v768_v28  ;;  %v725_v0 = vld [vmem:[#allocation13 + $0x2b8] sm:$0xff] }
 0x209   :  { %1137 = vmatpush.msrb.mxu2 %v840_v29  ;;  %1120 = vmatmul.f32.vlgmr.msrb.gmra.mxu1 %v2148_v25  ;;  %v797_v1 = vld [vmem:[#allocation13 + $0x4f8] sm:$0xff] }
 0x20a   :  { %1148 = vmatpush.msrb.mxu3 %v685_v30  ;;  %1166 = vmatpush.msra.mxu0 %v757_v31  ;;  %v869_v2 = vld [vmem:[#allocation13 + $0x738] sm:$0xff]  ;;  %v1252_v31 = vld [vmem:[#allocation16 + $0xc0] sm:$0xff] }
 0x20b   :  { %1184 = vmatpush.msra.mxu1 %v829_v32  ;;  %1138 = vmatpush.msrb.mxu2 %v836_v33  ;;  %v649_v3 = vld [vmem:[#allocation13 + $0x58] sm:$0xff]  ;;  %v1288_v32 = vld [vmem:[#allocation16 + $0x1e0] sm:$0xff] }
 0x20c   :  { %1149 = vmatpush.msrb.mxu3 %v681_v35  ;;  %1167 = vmatpush.msra.mxu0 %v753_v36  ;;  %v721_v4 = vld [vmem:[#allocation13 + $0x298] sm:$0xff] }
 0x20d   :  { %1185 = vmatpush.msra.mxu1 %v825_v37  ;;  %1139 = vmatpush.msrb.mxu2 %v832_v38  ;;  %v793_v5 = vld [vmem:[#allocation13 + $0x4d8] sm:$0xff] }
 0x20e   :  { %1140 = vmatmul.f32.vlgmr.msrb.gmra.mxu2 %v2152_v34  ;;  %1150 = vmatpush.msrb.mxu3 %v677_v39  ;;  %v865_v6 = vld [vmem:[#allocation13 + $0x718] sm:$0xff]  ;;  %v1248_v39 = vld [vmem:[#allocation16 + $0xa0] sm:$0xff] }
 0x20f   :  { %1168 = vmatpush.msra.mxu0 %v749_v40  ;;  %1186 = vmatpush.msra.mxu1 %v821_v41  ;;  %v645_v8 = vld [vmem:[#allocation13 + $0x38] sm:$0xff]  ;;  %v1284_v40 = vld [vmem:[#allocation16 + $0x1c0] sm:$0xff] }
 0x210   :  { %1204 = vmatpush.msra.mxu2 %v893_v42  ;;  %1151 = vmatpush.msrb.mxu3 %v673_v43  ;;  %v717_v9 = vld [vmem:[#allocation13 + $0x278] sm:$0xff]  ;;  %v1280_v43 = vld [vmem:[#allocation16 + $0x1a0] sm:$0xff] }
 0x211   :  { %1169 = vmatpush.msra.mxu0 %v745_v44  ;;  %1187 = vmatpush.msra.mxu1 %v817_v45  ;;  %v789_v10 = vld [vmem:[#allocation13 + $0x4b8] sm:$0xff] }
 0x212   :  { %1205 = vmatpush.msra.mxu2 %v889_v46  ;;  %1152 = vmatpush.msrb.mxu3 %v669_v47  ;;  %v861_v11 = vld [vmem:[#allocation13 + $0x6f8] sm:$0xff]  ;;  %v1240_v46 = vld [vmem:[#allocation16 + $0x60] sm:$0xff] }
 0x213   :  { %1170 = vmatpush.msra.mxu0 %v741_v48  ;;  %1188 = vmatpush.msra.mxu1 %v813_v49  ;;  %v641_v12 = vld [vmem:[#allocation13 + $0x18] sm:$0xff]  ;;  %v1276_v47 = vld [vmem:[#allocation16 + $0x180] sm:$0xff] }
 0x214   :  { %1206 = vmatpush.msra.mxu2 %v885_v50  ;;  %1153 = vmatpush.msrb.mxu3 %v665_v51  ;;  %v713_v13 = vld [vmem:[#allocation13 + $0x258] sm:$0xff]  ;;  %v1236_v50 = vld [vmem:[#allocation16 + $0x40] sm:$0xff] }
 0x215   :  { %1171 = vmatpush.msra.mxu0 %v737_v52  ;;  %1189 = vmatpush.msra.mxu1 %v809_v53  ;;  %v785_v14 = vld [vmem:[#allocation13 + $0x498] sm:$0xff]  ;;  %v1232_v53 = vld [vmem:[#allocation16 + $0x20] sm:$0xff] }
 0x216   :  { %1207 = vmatpush.msra.mxu2 %v881_v54  ;;  %1154 = vmatpush.msrb.mxu3 %v661_v55  ;;  %v857_v16 = vld [vmem:[#allocation13 + $0x6d8] sm:$0xff]  ;;  %v1268_v54 = vld [vmem:[#allocation16 + $0x140] sm:$0xff] }
 0x217   :  { %1172 = vmatpush.msra.mxu0 %v733_v56  ;;  %1190 = vmatpush.msra.mxu1 %v805_v57  ;;  %v709_v17 = vld [vmem:[#allocation13 + $0x238] sm:$0xff] }
 0x218   :  { %1208 = vmatpush.msra.mxu2 %v877_v58  ;;  %1155 = vmatpush.msrb.mxu3 %v657_v59  ;;  %v781_v18 = vld [vmem:[#allocation13 + $0x478] sm:$0xff]  ;;  %v1228_v58 = vld [vmem:[#allocation16] sm:$0xff] }
 0x219   :  { %1173 = vmatpush.msra.mxu0 %v729_v60  ;;  %1191 = vmatpush.msra.mxu1 %v801_v61  ;;  %v853_v19 = vld [vmem:[#allocation13 + $0x6b8] sm:$0xff]  ;;  %v1264_v60 = vld [vmem:[#allocation16 + $0x120] sm:$0xff] }
 0x21a   :  { %1209 = vmatpush.msra.mxu2 %v873_v62  ;;  %1156 = vmatpush.msrb.mxu3 %v653_v63  ;;  %v1258_v20 = vld [vmem:[#allocation16 + $0xf0] sm:$0xff]  ;;  %v1259_v59 = vld [vmem:[#allocation16 + $0xf8] sm:$0xff]  ;;  %v1316_v61 = vld [vmem:[#allocation16 + $0x2c0] sm:$0xff] }
 0x21b   :  { %1174 = vmatpush.msra.mxu0 %v725_v0  ;;  %1192 = vmatpush.msra.mxu1 %v797_v1  ;;  %v705_v21 = vld [vmem:[#allocation13 + $0x218] sm:$0xff]  ;;  %v1257_v62 = vld [vmem:[#allocation16 + $0xe8] sm:$0xff]  ;;  %v1260_v1 = vld [vmem:[#allocation16 + $0x100] sm:$0xff] }
 0x21c   :  { %1210 = vmatpush.msra.mxu2 %v869_v2  ;;  %1157 = vmatpush.msrb.mxu3 %v649_v3  ;;  %v777_v22 = vld [vmem:[#allocation13 + $0x458] sm:$0xff] }
 0x21d   :  { %1175 = vmatpush.msra.mxu0 %v721_v4  ;;  %1193 = vmatpush.msra.mxu1 %v793_v5  ;;  %v849_v23 = vld [vmem:[#allocation13 + $0x698] sm:$0xff]  ;;  %v1253_v4 = vld [vmem:[#allocation16 + $0xc8] sm:$0xff]  ;;  %v1312_v5 = vld [vmem:[#allocation16 + $0x2a0] sm:$0xff] }
 0x21e   :  { %1211 = vmatpush.msra.mxu2 %v865_v6  ;;  %1158 = vmatpush.msrb.mxu3 %v645_v8  ;;  %v773_v24 = vld [vmem:[#allocation13 + $0x438] sm:$0xff]  ;;  %v1289_v6 = vld [vmem:[#allocation16 + $0x1e8] sm:$0xff] }
 0x21f   :  { %1176 = vmatpush.msra.mxu0 %v717_v9  ;;  %1194 = vmatpush.msra.mxu1 %v789_v10  ;;  %v845_v27 = vld [vmem:[#allocation13 + $0x678] sm:$0xff] }
 0x220   :  { %1212 = vmatpush.msra.mxu2 %v861_v11  ;;  %1159 = vmatpush.msrb.mxu3 %v641_v12  ;;  %v1290_v28 = vld [vmem:[#allocation16 + $0x1f0] sm:$0xff]  ;;  %v1255_v0 = vld [vmem:[#allocation16 + $0xd8] sm:$0xff]  ;;  %v1308_v11 = vld [vmem:[#allocation16 + $0x280] sm:$0xff] }
 0x221   :  { %1177 = vmatpush.msra.mxu0 %v713_v13  ;;  %1195 = vmatpush.msra.mxu1 %v785_v14  ;;  %v769_v29 = vld [vmem:[#allocation13 + $0x418] sm:$0xff]  ;;  %v1249_v12 = vld [vmem:[#allocation16 + $0xa8] sm:$0xff] }
 0x222   :  { %1213 = vmatpush.msra.mxu2 %v857_v16  ;;  %1160 = vmatmul.f32.vlgmr.msrb.gmra.mxu3 %v2142_v7  ;;  %v1254_v30 = vld [vmem:[#allocation16 + $0xd0] sm:$0xff]  ;;  %v1291_v3 = vld [vmem:[#allocation16 + $0x1f8] sm:$0xff]  ;;  %v1285_v13 = vld [vmem:[#allocation16 + $0x1c8] sm:$0xff] }
 0x223   :  { %1178 = vmatpush.msra.mxu0 %v709_v17  ;;  %1196 = vmatpush.msra.mxu1 %v781_v18  ;;  %v841_v7 = vld [vmem:[#allocation13 + $0x658] sm:$0xff]  ;;  %v1245_v18 = vld [vmem:[#allocation16 + $0x88] sm:$0xff] }
 0x224   :  { %1214 = vmatpush.msra.mxu2 %v853_v19  ;;  %1362 = vmatpush.msra.mxu3 %v1258_v20  ;;  %v837_v33 = vld [vmem:[#allocation13 + $0x638] sm:$0xff]  ;;  %v1304_v19 = vld [vmem:[#allocation16 + $0x260] sm:$0xff]  ;;  %v1281_v20 = vld [vmem:[#allocation16 + $0x1a8] sm:$0xff] }
 0x225   :  { %1179 = vmatpush.msra.mxu0 %v705_v21  ;;  %1197 = vmatpush.msra.mxu1 %v777_v22  ;;  %v1322_v35 = vld [vmem:[#allocation16 + $0x2f0] sm:$0xff]  ;;  %v1251_v9 = vld [vmem:[#allocation16 + $0xb8] sm:$0xff] }
 0x226   :  { %1215 = vmatpush.msra.mxu2 %v849_v23  ;;  %1180 = vmatmul.f32.vlgmr.msra.gmra.mxu0 %v2145_v15  ;;  %v1250_v36 = vld [vmem:[#allocation16 + $0xb0] sm:$0xff]  ;;  %v1320_v15 = vld [vmem:[#allocation16 + $0x2e0] sm:$0xff]  ;;  %v1287_v10 = vld [vmem:[#allocation16 + $0x1d8] sm:$0xff] }
 0x227   :  { %1198 = vmatpush.msra.mxu1 %v773_v24  ;;  %1363 = vmatpush.msra.mxu3 %v1256_v26  ;;  %v1286_v37 = vld [vmem:[#allocation16 + $0x1d0] sm:$0xff]  ;;  %v1247_v14 = vld [vmem:[#allocation16 + $0x98] sm:$0xff]  ;;  %v1300_v24 = vld [vmem:[#allocation16 + $0x240] sm:$0xff] }
 0x228   :  { %1216 = vmatpush.msra.mxu2 %v845_v27  ;;  %1382 = vmatpush.msrb.mxu0 %v1290_v28  ;;  %v833_v38 = vld [vmem:[#allocation13 + $0x618] sm:$0xff]  ;;  %v1241_v26 = vld [vmem:[#allocation16 + $0x68] sm:$0xff] }
 0x229   :  { %1199 = vmatpush.msra.mxu1 %v769_v29  ;;  %1364 = vmatpush.msra.mxu3 %v1254_v30  ;;  %v1246_v41 = vld [vmem:[#allocation16 + $0x90] sm:$0xff]  ;;  %v1283_v17 = vld [vmem:[#allocation16 + $0x1b8] sm:$0xff]  ;;  %v1277_v27 = vld [vmem:[#allocation16 + $0x188] sm:$0xff] }
 0x22a   :  { %1217 = vmatpush.msra.mxu2 %v841_v7  ;;  %1200 = vmatmul.f32.vlgmr.msra.gmra.mxu1 %v2148_v25  ;;  %v1282_v42 = vld [vmem:[#allocation16 + $0x1b0] sm:$0xff]  ;;  %v1244_v25 = vld [vmem:[#allocation16 + $0x80] sm:$0xff]  ;;  %v1243_v21 = vld [vmem:[#allocation16 + $0x78] sm:$0xff] }
 0x22b   :  { %1365 = vmatpush.msra.mxu3 %v1252_v31  ;;  %1383 = vmatpush.msrb.mxu0 %v1288_v32  ;;  %v1242_v44 = vld [vmem:[#allocation16 + $0x70] sm:$0xff]  ;;  %v1279_v23 = vld [vmem:[#allocation16 + $0x198] sm:$0xff]  ;;  %v1237_v7 = vld [vmem:[#allocation16 + $0x48] sm:$0xff] }
 0x22c   :  { %1218 = vmatpush.msra.mxu2 %v837_v33  ;;  %1402 = vmatpush.msrb.mxu1 %v1322_v35  ;;  %v1278_v45 = vld [vmem:[#allocation16 + $0x190] sm:$0xff]  ;;  %v1239_v29 = vld [vmem:[#allocation16 + $0x58] sm:$0xff]  ;;  %v1296_v32 = vld [vmem:[#allocation16 + $0x220] sm:$0xff] }
 0x22d   :  { %1366 = vmatpush.msra.mxu3 %v1250_v36  ;;  %1384 = vmatpush.msrb.mxu0 %v1286_v37  ;;  %v1238_v48 = vld [vmem:[#allocation16 + $0x50] sm:$0xff]  ;;  %v1275_v30 = vld [vmem:[#allocation16 + $0x178] sm:$0xff]  ;;  %v1273_v33 = vld [vmem:[#allocation16 + $0x168] sm:$0xff] }
 0x22e   :  { %1219 = vmatpush.msra.mxu2 %v833_v38  ;;  %1403 = vmatpush.msrb.mxu1 %v1320_v15  ;;  %v1274_v49 = vld [vmem:[#allocation16 + $0x170] sm:$0xff]  ;;  %v1235_v31 = vld [vmem:[#allocation16 + $0x38] sm:$0xff]  ;;  %v1233_v35 = vld [vmem:[#allocation16 + $0x28] sm:$0xff] }
 0x22f   :  { %1220 = vmatmul.f32.vlgmr.msra.gmra.mxu2 %v2152_v34  ;;  %1367 = vmatpush.msra.mxu3 %v1248_v39  ;;  %v1272_v34 = vld [vmem:[#allocation16 + $0x160] sm:$0xff]  ;;  %v1234_v51 = vld [vmem:[#allocation16 + $0x30] sm:$0xff]  ;;  %v1271_v37 = vld [vmem:[#allocation16 + $0x158] sm:$0xff] }
 0x230   :  { %1385 = vmatpush.msrb.mxu0 %v1284_v40  ;;  %v1270_v52 = vld [vmem:[#allocation16 + $0x150] sm:$0xff]  ;;  %v2166_v38 = vld [vmem:[#allocation14] sm:$0xf]  ;;  %v1292_v15 = vld [vmem:[#allocation16 + $0x200] sm:$0xff] }
 0x231   :  { %1368 = vmatpush.msra.mxu3 %v1246_v41  ;;  %v1230_v55 = vld [vmem:[#allocation16 + $0x10] sm:$0xff]  ;;  %v1269_v39 = vld [vmem:[#allocation16 + $0x148] sm:$0xff]  ;;  %v1231_v40 = vld [vmem:[#allocation16 + $0x18] sm:$0xff] }
 0x232   :  { %1386 = vmatpush.msrb.mxu0 %v1282_v42  ;;  %v1266_v56 = vld [vmem:[#allocation16 + $0x130] sm:$0xff]  ;;  %v1323_v42 = vld [vmem:[#allocation16 + $0x2f8] sm:$0xff] }
 0x233   :  { %1369 = vmatpush.msra.mxu3 %v1244_v25  ;;  %v1318_v57 = vld [vmem:[#allocation16 + $0x2d0] sm:$0xff]  ;;  %v1267_v25 = vld [vmem:[#allocation16 + $0x138] sm:$0xff] }
 0x234   :  { %1387 = vmatpush.msrb.mxu0 %v1280_v43  ;;  %1404 = vmatpush.msrb.mxu1 %v1318_v57  ;;  %v1262_v63 = vld [vmem:[#allocation16 + $0x110] sm:$0xff]  ;;  %v1352_v43 = vld [vmem:[#allocation16 + $0x3e0] sm:$0xff] }
 0x235   :  { %1370 = vmatpush.msra.mxu3 %v1242_v44  ;;  %v1314_v2 = vld [vmem:[#allocation16 + $0x2b0] sm:$0xff]  ;;  %v1229_v44 = vld [vmem:[#allocation16 + $0x8] sm:$0xff] }
 0x236   :  { %1388 = vmatpush.msrb.mxu0 %v1278_v45  ;;  %1405 = vmatpush.msrb.mxu1 %v1316_v61  ;;  %v1310_v8 = vld [vmem:[#allocation16 + $0x290] sm:$0xff]  ;;  %v1321_v45 = vld [vmem:[#allocation16 + $0x2e8] sm:$0xff]  ;;  %v897_v61 = vperm.slane %v2166_v38, 1 }
 0x237   :  { %1371 = vmatpush.msra.mxu3 %v1240_v46  ;;  %v1306_v16 = vld [vmem:[#allocation16 + $0x270] sm:$0xff]  ;;  %v896_v46 = vperm.slane %v2166_v38, 0 }
 0x238   :  { %1389 = vmatpush.msrb.mxu0 %v1276_v47  ;;  %1406 = vmatpush.msrb.mxu1 %v1314_v2  ;;  %v1302_v22 = vld [vmem:[#allocation16 + $0x250] sm:$0xff]  ;;  %v1265_v47 = vld [vmem:[#allocation16 + $0x128] sm:$0xff] }
 0x239   :  { %1372 = vmatpush.msra.mxu3 %v1238_v48  ;;  %v1298_v28 = vld [vmem:[#allocation16 + $0x230] sm:$0xff] }
 0x23a   :  { %1390 = vmatpush.msrb.mxu0 %v1274_v49  ;;  %1407 = vmatpush.msrb.mxu1 %v1312_v5  ;;  %v1294_v36 = vld [vmem:[#allocation16 + $0x210] sm:$0xff] }
 0x23b   :  { %1373 = vmatpush.msra.mxu3 %v1236_v50  ;;  %v1354_v41 = vld [vmem:[#allocation16 + $0x3f0] sm:$0xff]  ;;  %v1319_v50 = vld [vmem:[#allocation16 + $0x2d8] sm:$0xff] }
 0x23c   :  { %1391 = vmatpush.msrb.mxu0 %v1272_v34  ;;  %1408 = vmatpush.msrb.mxu1 %v1310_v8  ;;  %v1350_v49 = vld [vmem:[#allocation16 + $0x3d0] sm:$0xff]  ;;  %v1263_v34 = vld [vmem:[#allocation16 + $0x118] sm:$0xff] }
 0x23d   :  { %1374 = vmatpush.msra.mxu3 %v1234_v51  ;;  %1422 = vmatpush.msrb.mxu2 %v1354_v41  ;;  %v1346_v57 = vld [vmem:[#allocation16 + $0x3b0] sm:$0xff]  ;;  %v1347_v41 = vld [vmem:[#allocation16 + $0x3b8] sm:$0xff] }
 0x23e   :  { %1392 = vmatpush.msrb.mxu0 %v1270_v52  ;;  %1409 = vmatpush.msrb.mxu1 %v1308_v11  ;;  %v1348_v52 = vld [vmem:[#allocation16 + $0x3c0] sm:$0xff] }
 0x23f   :  { %1375 = vmatpush.msra.mxu3 %v1232_v53  ;;  %1423 = vmatpush.msrb.mxu2 %v1352_v43  ;;  %v1317_v53 = vld [vmem:[#allocation16 + $0x2c8] sm:$0xff]  ;;  %v1343_v43 = vld [vmem:[#allocation16 + $0x398] sm:$0xff] }
 0x240   :  { %1393 = vmatpush.msrb.mxu0 %v1268_v54  ;;  %1410 = vmatpush.msrb.mxu1 %v1306_v16  ;;  %v1261_v54 = vld [vmem:[#allocation16 + $0x108] sm:$0xff] }
 0x241   :  { %1376 = vmatpush.msra.mxu3 %v1230_v55  ;;  %1424 = vmatpush.msrb.mxu2 %v1350_v49  ;;  %v1305_v16 = vld [vmem:[#allocation16 + $0x268] sm:$0xff] }
 0x242   :  { %1394 = vmatpush.msrb.mxu0 %v1266_v56  ;;  %1411 = vmatpush.msrb.mxu1 %v1304_v19  ;;  %v1332_v19 = vld [vmem:[#allocation16 + $0x340] sm:$0xff] }
 0x243   :  { %1377 = vmatpush.msra.mxu3 %v1228_v58  ;;  %1425 = vmatpush.msrb.mxu2 %v1348_v52  ;;  %v1315_v58 = vld [vmem:[#allocation16 + $0x2b8] sm:$0xff] }
 0x244   :  { %1395 = vmatpush.msrb.mxu0 %v1264_v60  ;;  %1412 = vmatpush.msrb.mxu1 %v1302_v22  ;;  %v1313_v60 = vld [vmem:[#allocation16 + $0x2a8] sm:$0xff]  ;;  %v1335_v52 = vld [vmem:[#allocation16 + $0x358] sm:$0xff] }
 0x245   :  { %1442 = vmatpush.msrb.mxu3 %v1259_v59  ;;  %v1344_v59 = vld [vmem:[#allocation16 + $0x3a0] sm:$0xff]  ;;  %1426 = vmatpush.msrb.mxu2 %v1346_v57  ;;  %v1327_v57 = vld [vmem:[#allocation16 + $0x318] sm:$0xff] }
 0x246   :  { %1396 = vmatpush.msrb.mxu0 %v1262_v63  ;;  %1413 = vmatpush.msrb.mxu1 %v1300_v24  ;;  %v1311_v63 = vld [vmem:[#allocation16 + $0x298] sm:$0xff] }
 0x247   :  { %1443 = vmatpush.msrb.mxu3 %v1257_v62  ;;  %v1342_v62 = vld [vmem:[#allocation16 + $0x390] sm:$0xff]  ;;  %1427 = vmatpush.msrb.mxu2 %v1344_v59  ;;  %v1299_v24 = vld [vmem:[#allocation16 + $0x238] sm:$0xff]  ;;  %v899_v59 = vperm.slane %v2166_v38, 3 }
 0x248   :  { %1397 = vmatpush.msrb.mxu0 %v1260_v1  ;;  %1414 = vmatpush.msrb.mxu1 %v1298_v28  ;;  %v1328_v28 = vld [vmem:[#allocation16 + $0x320] sm:$0xff] }
 0x249   :  { %1444 = vmatpush.msrb.mxu3 %v1255_v0  ;;  %1428 = vmatpush.msrb.mxu2 %v1342_v62 }
 0x24a   :  { %1462 = vmatpush.msra.mxu0 %v1291_v3  ;;  %1415 = vmatpush.msrb.mxu1 %v1296_v32  ;;  %v1340_v3 = vld [vmem:[#allocation16 + $0x380] sm:$0xff] }
 0x24b   :  { %1445 = vmatpush.msrb.mxu3 %v1253_v4  ;;  %v1309_v4 = vld [vmem:[#allocation16 + $0x288] sm:$0xff]  ;;  %1429 = vmatpush.msrb.mxu2 %v1340_v3  ;;  %v1324_v32 = vld [vmem:[#allocation16 + $0x300] sm:$0xff] }
 0x24c   :  { %1463 = vmatpush.msra.mxu0 %v1289_v6  ;;  %1416 = vmatpush.msrb.mxu1 %v1294_v36  ;;  %v1353_v36 = vld [vmem:[#allocation16 + $0x3e8] sm:$0xff] }
 0x24d   :  { %1446 = vmatpush.msrb.mxu3 %v1251_v9  ;;  %v1338_v9 = vld [vmem:[#allocation16 + $0x370] sm:$0xff] }
 0x24e   :  { %1464 = vmatpush.msra.mxu0 %v1287_v10  ;;  %1417 = vmatpush.msrb.mxu1 %v1292_v15  ;;  %v1307_v10 = vld [vmem:[#allocation16 + $0x278] sm:$0xff]  ;;  %v898_v15 = vperm.slane %v2166_v38, 2  ;;  %v1553_v38 = vld [vmem:[#allocation17 + $0xe8] sm:$0xff] }
 0x24f   :  { %1447 = vmatpush.msrb.mxu3 %v1249_v12  ;;  %1430 = vmatpush.msrb.mxu2 %v1338_v9  ;;  %v1537_v9 = vld [vmem:[#allocation17 + $0x68] sm:$0xff] }
 0x250   :  { %1465 = vmatpush.msra.mxu0 %v1285_v13  ;;  %1482 = vmatpush.msra.mxu1 %v1323_v42 }
 0x251   :  { %1448 = vmatpush.msrb.mxu3 %v1247_v14  ;;  %v1336_v14 = vld [vmem:[#allocation16 + $0x360] sm:$0xff] }
 0x252   :  { %1466 = vmatpush.msra.mxu0 %v1283_v17  ;;  %1483 = vmatpush.msra.mxu1 %v1321_v45  ;;  %v1334_v17 = vld [vmem:[#allocation16 + $0x350] sm:$0xff]  ;;  %v1341_v45 = vld [vmem:[#allocation16 + $0x388] sm:$0xff] }
 0x253   :  { %1449 = vmatpush.msrb.mxu3 %v1245_v18  ;;  %1431 = vmatpush.msrb.mxu2 %v1336_v14  ;;  %v1303_v18 = vld [vmem:[#allocation16 + $0x258] sm:$0xff] }
 0x254   :  { %1467 = vmatpush.msra.mxu0 %v1281_v20  ;;  %1484 = vmatpush.msra.mxu1 %v1319_v50  ;;  %v1551_v14 = vld [vmem:[#allocation17 + $0xd8] sm:$0xff] }
 0x255   :  { %1450 = vmatpush.msrb.mxu3 %v1243_v21  ;;  %1432 = vmatpush.msrb.mxu2 %v1334_v17  ;;  %v1301_v21 = vld [vmem:[#allocation16 + $0x248] sm:$0xff]  ;;  %v1550_v17 = vld [vmem:[#allocation17 + $0xd0] sm:$0xff] }
 0x256   :  { %1468 = vmatpush.msra.mxu0 %v1279_v23  ;;  %1485 = vmatpush.msra.mxu1 %v1317_v53  ;;  %v1330_v23 = vld [vmem:[#allocation16 + $0x330] sm:$0xff] }
 0x257   :  { %1451 = vmatpush.msrb.mxu3 %v1241_v26  ;;  %1433 = vmatpush.msrb.mxu2 %v1332_v19  ;;  %v1549_v19 = vld [vmem:[#allocation17 + $0xc8] sm:$0xff] }
 0x258   :  { %1469 = vmatpush.msra.mxu0 %v1277_v27  ;;  %1486 = vmatpush.msra.mxu1 %v1315_v58  ;;  %v1325_v58 = vld [vmem:[#allocation16 + $0x308] sm:$0xff] }
 0x259   :  { %1452 = vmatpush.msrb.mxu3 %v1239_v29  ;;  %v1297_v29 = vld [vmem:[#allocation16 + $0x228] sm:$0xff]  ;;  %1434 = vmatpush.msrb.mxu2 %v1330_v23  ;;  %v1547_v23 = vld [vmem:[#allocation17 + $0xb8] sm:$0xff] }
 0x25a   :  { %1470 = vmatpush.msra.mxu0 %v1275_v30  ;;  %1487 = vmatpush.msra.mxu1 %v1313_v60 }
 0x25b   :  { %1453 = vmatpush.msrb.mxu3 %v1237_v7  ;;  %v1326_v7 = vld [vmem:[#allocation16 + $0x310] sm:$0xff]  ;;  %1435 = vmatpush.msrb.mxu2 %v1328_v28  ;;  %v1527_v28 = vld [vmem:[#allocation17 + $0x18] sm:$0xff] }
 0x25c   :  { %1471 = vmatpush.msra.mxu0 %v1273_v33  ;;  %1488 = vmatpush.msra.mxu1 %v1311_v63  ;;  %v1293_v33 = vld [vmem:[#allocation16 + $0x208] sm:$0xff] }
 0x25d   :  { %1454 = vmatpush.msrb.mxu3 %v1235_v31  ;;  %v1295_v31 = vld [vmem:[#allocation16 + $0x218] sm:$0xff]  ;;  %1436 = vmatpush.msrb.mxu2 %v1326_v7  ;;  %v1525_v7 = vld [vmem:[#allocation17 + $0x8] sm:$0xff] }
 0x25e   :  { %1472 = vmatpush.msra.mxu0 %v1271_v37  ;;  %1489 = vmatpush.msra.mxu1 %v1309_v4  ;;  %v1351_v37 = vld [vmem:[#allocation16 + $0x3d8] sm:$0xff] }
 0x25f   :  { %1455 = vmatpush.msrb.mxu3 %v1233_v35  ;;  %v941_v55 = vpop.f32.mrf.mxu0  ;;  %v1355_v35 = vld [vmem:[#allocation16 + $0x3f8] sm:$0xff]  ;;  %1437 = vmatpush.msrb.mxu2 %v1324_v32  ;;  %v1524_v32 = vld [vmem:[#allocation17] sm:$0xff] }
 0x260   :  { %1473 = vmatpush.msra.mxu0 %v1269_v39  ;;  %1490 = vmatpush.msra.mxu1 %v1307_v10  ;;  %v1554_v10 = vld [vmem:[#allocation17 + $0xf0] sm:$0xff] }
 0x261   :  { %1456 = vmatpush.msrb.mxu3 %v1231_v40  ;;  %v921_v48 = vpop.f32.mrf.mxu3  ;;  %1502 = vmatpush.msra.mxu2 %v1355_v35  ;;  %v1349_v40 = vld [vmem:[#allocation16 + $0x3c8] sm:$0xff]  ;;  %v1543_v35 = vld [vmem:[#allocation17 + $0x98] sm:$0xff] }
 0x262   :  { %1474 = vmatpush.msra.mxu0 %v1267_v25  ;;  %v922_v51 = vadd.f32 %v921_v48, %v896_v46  ;;  %1491 = vmatpush.msra.mxu1 %v1305_v16  ;;  %v1345_v25 = vld [vmem:[#allocation16 + $0x3a8] sm:$0xff]  ;;  %v1534_v16 = vld [vmem:[#allocation17 + $0x50] sm:$0xff] }
 0x263   :  { %1457 = vmatpush.msrb.mxu3 %v1229_v44  ;;  %v961_v0 = vpop.f32.mrf.mxu1  ;;  %1503 = vmatpush.msra.mxu2 %v1353_v36  ;;  %v1542_v36 = vld [vmem:[#allocation17 + $0x90] sm:$0xff] }
 0x264   :  { %1475 = vmatpush.msra.mxu0 %v1265_v47  ;;  %v942_v56 = vadd.f32 %v941_v55, %v922_v51  ;;  %1492 = vmatpush.msra.mxu1 %v1303_v18  ;;  %v1339_v47 = vld [vmem:[#allocation16 + $0x378] sm:$0xff]  ;;  %v1533_v18 = vld [vmem:[#allocation17 + $0x48] sm:$0xff] }
 0x265   :  { %1504 = vmatpush.msra.mxu2 %v1351_v37  ;;  %v1331_v55 = vld [vmem:[#allocation16 + $0x338] sm:$0xff]  ;;  %v1541_v37 = vld [vmem:[#allocation17 + $0x88] sm:$0xff] }
 0x266   :  { %1476 = vmatpush.msra.mxu0 %v1263_v34  ;;  %v962_v2 = vadd.f32 %v961_v0, %v942_v56  ;;  %1493 = vmatpush.msra.mxu1 %v1301_v21  ;;  %v1337_v34 = vld [vmem:[#allocation16 + $0x368] sm:$0xff]  ;;  %v1548_v21 = vld [vmem:[#allocation17 + $0xc0] sm:$0xff] }
 0x267   :  { %1505 = vmatpush.msra.mxu2 %v1349_v40  ;;  %v1329_v56 = vld [vmem:[#allocation16 + $0x328] sm:$0xff]  ;;  %v1615_v40 = vld [vmem:[#allocation19 + $0x70] sm:$0xff] }
 0x268   :  { %1477 = vmatpush.msra.mxu0 %v1261_v54  ;;  %v1021_v12 = vpop.f32.mrf.mxu0  ;;  %1494 = vmatpush.msra.mxu1 %v1299_v24  ;;  %v1333_v54 = vld [vmem:[#allocation16 + $0x348] sm:$0xff]  ;;  %v1530_v24 = vld [vmem:[#allocation17 + $0x30] sm:$0xff] }
 0x269   :  { %v1001_v1 = vpop.f32.mrf.mxu3  ;;  %1506 = vmatpush.msra.mxu2 %v1347_v41  ;;  %v1614_v41 = vld [vmem:[#allocation19 + $0x68] sm:$0xff] }
 0x26a   :  { %v1002_v6 = vadd.f32 %v1001_v1, %v897_v61  ;;  %1495 = vmatpush.msra.mxu1 %v1297_v29  ;;  %v1526_v29 = vld [vmem:[#allocation17 + $0x10] sm:$0xff] }
 0x26b   :  { %1507 = vmatpush.msra.mxu2 %v1345_v25  ;;  %v1356_v25 = vld [vmem:[%s2194_s10] sm:$0x3] }
 0x26c   :  { %v1022_v13 = vadd.f32 %v1021_v12, %v1002_v6  ;;  %v1041_v20 = vpop.f32.mrf.mxu1  ;;  %1496 = vmatpush.msra.mxu1 %v1295_v31  ;;  %v1538_v6 = vld [vmem:[#allocation17 + $0x70] sm:$0xff]  ;;  %v1552_v12 = vld [vmem:[#allocation17 + $0xe0] sm:$0xff]  ;;  %v1545_v31 = vld [vmem:[#allocation17 + $0xa8] sm:$0xff] }
 0x26d   :  { %v981_v5 = vpop.f32.mrf.mxu2  ;;  %1508 = vmatpush.msra.mxu2 %v1343_v43  ;;  %v1612_v43 = vld [vmem:[#allocation19 + $0x58] sm:$0xff] }
 0x26e   :  { %v982_v8 = vadd.f32 %v981_v5, %v962_v2  ;;  %v1042_v22 = vadd.f32 %v1041_v20, %v1022_v13  ;;  %1497 = vmatpush.msra.mxu1 %v1293_v33  ;;  %v1539_v5 = vld [vmem:[#allocation17 + $0x78] sm:$0xff]  ;;  %v1532_v20 = vld [vmem:[#allocation17 + $0x40] sm:$0xff] }
 0x26f   :  { %1509 = vmatpush.msra.mxu2 %v1341_v45  ;;  %v1535_v13 = vld [vmem:[#allocation17 + $0x58] sm:$0xff]  ;;  %v1544_v33 = vld [vmem:[#allocation17 + $0xa0] sm:$0xff]  ;;  %v1358_v45 = vperm.slane %v1356_v25, 0 }
 0x270   :  { %v1224_v11 = vmax.f32 %v982_v8, 0.0  ;;  %v1555_v8 = vld [vmem:[#allocation17 + $0xf8] sm:$0xff] }
 0x271   :  { %1510 = vmatpush.msra.mxu2 %v1339_v47  ;;  %v1610_v47 = vld [vmem:[#allocation19 + $0x48] sm:$0xff] }
 0x272   :  { %1378 = vmatmul.f32.vlgmr.msra.gmra.mxu3 %v1224_v11 }
 0x273   :  { %1511 = vmatpush.msra.mxu2 %v1337_v34  ;;  %1560 = vmatpush.msra.mxu3 %v1539_v5 }
 0x275   :  { %1512 = vmatpush.msra.mxu2 %v1335_v52  ;;  %1561 = vmatpush.msra.mxu3 %v1538_v6  ;;  %v1604_v6 = vld [vmem:[#allocation19 + $0x18] sm:$0xff] }
 0x277   :  { %v1061_v26 = vpop.f32.mrf.mxu2  ;;  %1513 = vmatpush.msra.mxu2 %v1333_v54  ;;  %1562 = vmatpush.msra.mxu3 %v1537_v9  ;;  %v1607_v54 = vld [vmem:[#allocation19 + $0x30] sm:$0xff]  ;;  %v1602_v9 = vld [vmem:[#allocation19 + $0x8] sm:$0xff] }
 0x278   :  { %v1062_v27 = vadd.f32 %v1061_v26, %v1042_v22  ;;  %v1531_v22 = vld [vmem:[#allocation17 + $0x38] sm:$0xff]  ;;  %v1529_v26 = vld [vmem:[#allocation17 + $0x28] sm:$0xff] }
 0x279   :  { %1514 = vmatpush.msra.mxu2 %v1331_v55 }
 0x27a   :  { %v1225_v30 = vmax.f32 %v1062_v27, 0.0  ;;  %1458 = vmatmul.f32.vlgmr.msrb.gmra.mxu3 %v1224_v11  ;;  %v1536_v11 = vld [vmem:[#allocation17 + $0x60] sm:$0xff] }
 0x27b   :  { %1515 = vmatpush.msra.mxu2 %v1329_v56  ;;  %1563 = vmatpush.msra.mxu3 %v1536_v11  ;;  %v1528_v27 = vld [vmem:[#allocation17 + $0x20] sm:$0xff] }
 0x27c   :  { %1398 = vmatmul.f32.vlgmr.msrb.gmra.mxu0 %v1225_v30 }
 0x27d   :  { %1516 = vmatpush.msra.mxu2 %v1327_v57  ;;  %1580 = vmatpush.msrb.mxu0 %v1555_v8  ;;  %v1606_v57 = vld [vmem:[#allocation19 + $0x28] sm:$0xff]  ;;  %v1603_v8 = vld [vmem:[#allocation19 + $0x10] sm:$0xff] }
 0x27e   :  { %1564 = vmatpush.msra.mxu3 %v1535_v13 }
 0x27f   :  { %1517 = vmatpush.msra.mxu2 %v1325_v58  ;;  %1581 = vmatpush.msrb.mxu0 %v1554_v10  ;;  %v1601_v10 = vld [vmem:[#allocation19] sm:$0xff] }
 0x280   :  { %1565 = vmatpush.msra.mxu3 %v1534_v16 }
 0x281   :  { %1582 = vmatpush.msrb.mxu0 %v1553_v38  ;;  %v1683_v38 = vld [vmem:[%s2196_s12] ss:$0 sm:$0xff] }
 0x282   :  { %v1101_v44 = vpop.f32.mrf.mxu0  ;;  %1566 = vmatpush.msra.mxu3 %v1533_v18 }
 0x283   :  { %v1081_v39 = vpop.f32.mrf.mxu3  ;;  %1583 = vmatpush.msrb.mxu0 %v1552_v12 }
 0x284   :  { %1478 = vmatmul.f32.vlgmr.msra.gmra.mxu0 %v1225_v30  ;;  %v1082_v42 = vadd.f32 %v1081_v39, %v898_v15  ;;  %1567 = vmatpush.msra.mxu3 %v1532_v20  ;;  %v1546_v30 = vld [vmem:[#allocation17 + $0xb0] sm:$0xff]  ;;  %v1540_v15 = vld [vmem:[#allocation17 + $0x80] sm:$0xff]  ;;  %v1616_v39 = vld [vmem:[#allocation19 + $0x78] sm:$0xff] }
 0x285   :  { %1584 = vmatpush.msrb.mxu0 %v1551_v14 }
 0x286   :  { %v1102_v46 = vadd.f32 %v1101_v44, %v1082_v42  ;;  %v1121_v48 = vpop.f32.mrf.mxu1  ;;  %1568 = vmatpush.msra.mxu3 %v1531_v22  ;;  %v1613_v42 = vld [vmem:[#allocation19 + $0x60] sm:$0xff] }
 0x287   :  { %1585 = vmatpush.msrb.mxu0 %v1550_v17  ;;  %v1684_v17 = vld [vmem:[%s2198_s14] ss:$0 sm:$0xff] }
 0x288   :  { %v1122_v49 = vadd.f32 %v1121_v48, %v1102_v46  ;;  %1569 = vmatpush.msra.mxu3 %v1530_v24  ;;  %v1611_v46 = vld [vmem:[#allocation19 + $0x50] sm:$0xff] }
 0x289   :  { %1586 = vmatpush.msrb.mxu0 %v1549_v19 }
 0x28a   :  { %1570 = vmatpush.msra.mxu3 %v1529_v26 }
 0x28b   :  { %1587 = vmatpush.msrb.mxu0 %v1548_v21 }
 0x28c   :  { %1571 = vmatpush.msra.mxu3 %v1528_v27 }
 0x28d   :  { %1588 = vmatpush.msrb.mxu0 %v1547_v23 }
 0x28e   :  { %1572 = vmatpush.msra.mxu3 %v1527_v28 }
 0x28f   :  { %1589 = vmatpush.msrb.mxu0 %v1546_v30 }
 0x290   :  { %1573 = vmatpush.msra.mxu3 %v1526_v29 }
 0x291   :  { %v1141_v50 = vpop.f32.mrf.mxu2  ;;  %1590 = vmatpush.msrb.mxu0 %v1545_v31 }
 0x292   :  { %v1142_v51 = vadd.f32 %v1141_v50, %v1122_v49  ;;  %1574 = vmatpush.msra.mxu3 %v1525_v7  ;;  %v1609_v50 = vld [vmem:[#allocation19 + $0x40] sm:$0xff] }
 0x293   :  { %1591 = vmatpush.msrb.mxu0 %v1544_v33 }
 0x294   :  { %v1226_v53 = vmax.f32 %v1142_v51, 0.0  ;;  %1575 = vmatpush.msra.mxu3 %v1524_v32  ;;  %v1608_v51 = vld [vmem:[#allocation19 + $0x38] sm:$0xff] }
 0x295   :  { %1592 = vmatpush.msrb.mxu0 %v1543_v35 }
 0x296   :  { %1418 = vmatmul.f32.vlgmr.msrb.gmra.mxu1 %v1226_v53 }
 0x297   :  { %1593 = vmatpush.msrb.mxu0 %v1542_v36  ;;  %1621 = vmatpush.msrb.mxu1 %v1616_v39 }
 0x299   :  { %1594 = vmatpush.msrb.mxu0 %v1541_v37  ;;  %1622 = vmatpush.msrb.mxu1 %v1615_v40 }
 0x29b   :  { %1595 = vmatpush.msrb.mxu0 %v1540_v15  ;;  %1623 = vmatpush.msrb.mxu1 %v1614_v41 }
 0x29d   :  { %1624 = vmatpush.msrb.mxu1 %v1613_v42 }
 0x29e   :  { %1498 = vmatmul.f32.vlgmr.msra.gmra.mxu1 %v1226_v53  ;;  %v1359_v53 = vperm.slane %v1356_v25, 1 }
 0x29f   :  { %1625 = vmatpush.msrb.mxu1 %v1612_v43 }
 0x2a1   :  { %1626 = vmatpush.msrb.mxu1 %v1611_v46 }
 0x2a3   :  { %v1181_v62 = vpop.f32.mrf.mxu0  ;;  %1627 = vmatpush.msrb.mxu1 %v1610_v47 }
 0x2a5   :  { %v1161_v60 = vpop.f32.mrf.mxu3  ;;  %1628 = vmatpush.msrb.mxu1 %v1609_v50 }
 0x2a6   :  { %v1162_v61 = vadd.f32 %v1161_v60, %v899_v59 }
 0x2a7   :  { %v1201_v0 = vpop.f32.mrf.mxu1  ;;  %1629 = vmatpush.msrb.mxu1 %v1608_v51 }
 0x2a8   :  { %v1182_v63 = vadd.f32 %v1181_v62, %v1162_v61  ;;  %v1605_v61 = vld [vmem:[#allocation19 + $0x20] sm:$0xff] }
 0x2a9   :  { %1630 = vmatpush.msrb.mxu1 %v1607_v54 }
 0x2aa   :  { %v1202_v1 = vadd.f32 %v1201_v0, %v1182_v63 }
 0x2ab   :  { %1631 = vmatpush.msrb.mxu1 %v1606_v57 }
 0x2ad   :  { %1632 = vmatpush.msrb.mxu1 %v1605_v61 }
 0x2af   :  { %1633 = vmatpush.msrb.mxu1 %v1604_v6 }
 0x2b1   :  { %1634 = vmatpush.msrb.mxu1 %v1603_v8 }
 0x2b2   :  { %v1221_v2 = vpop.f32.mrf.mxu2 }
 0x2b3   :  { %v1222_v3 = vadd.f32 %v1221_v2, %v1202_v1  ;;  %1635 = vmatpush.msrb.mxu1 %v1602_v9 }
 0x2b5   :  { %v1227_v4 = vmax.f32 %v1222_v3, 0.0  ;;  %1636 = vmatpush.msrb.mxu1 %v1601_v10 }
 0x2b7   :  { %1438 = vmatmul.f32.vlgmr.msrb.gmra.mxu2 %v1227_v4 }
 0x2bf   :  { %1518 = vmatmul.f32.vlgmr.msra.gmra.mxu2 %v1227_v4 }
 0x2f5   :  { %v1379_v44 = vpop.f32.mrf.mxu3 }
 0x2f6   :  { %v1380_v49 = vadd.f32 %v1379_v44, %v1358_v45 }
 0x2f9   :  { %v1399_v48 = vpop.f32.mrf.mxu0 }
 0x2fa   :  { %v1400_v52 = vadd.f32 %v1399_v48, %v1380_v49 }
 0x2fd   :  { %v1459_v55 = vpop.f32.mrf.mxu3 }
 0x2fe   :  { %v1460_v59 = vadd.f32 %v1459_v55, %v1359_v53 }
 0x301   :  { %v1479_v62 = vpop.f32.mrf.mxu0 }
 0x302   :  { %v1480_v1 = vadd.f32 %v1479_v62, %v1460_v59 }
 0x313   :  { %v1419_v34 = vpop.f32.mrf.mxu1 }
 0x314   :  { %v1420_v56 = vadd.f32 %v1419_v34, %v1400_v52 }
 0x31b   :  { %v1499_v0 = vpop.f32.mrf.mxu1 }
 0x31c   :  { %v1500_v2 = vadd.f32 %v1499_v0, %v1480_v1 }
 0x33a   :  { %v1439_v58 = vpop.f32.mrf.mxu2 }
 0x33b   :  { %v1440_v60 = vadd.f32 %v1439_v58, %v1420_v56 }
 0x33d   :  { %v1522_v63 = vmax.f32 %v1440_v60, 0.0 }
 0x33f   :  { %1576 = vmatmul.f32.vlgmr.msra.gmra.mxu3 %v1522_v63 }
 0x342   :  { %v1519_v3 = vpop.f32.mrf.mxu2 }
 0x343   :  { %v1520_v4 = vadd.f32 %v1519_v3, %v1500_v2 }
 0x345   :  { %v1523_v5 = vmax.f32 %v1520_v4, 0.0 }
 0x347   :  { %1596 = vmatmul.f32.vlgmr.msrb.gmra.mxu0 %v1523_v5 }
 0x3c2   :  { %v1577_v11 = vpop.f32.mrf.mxu3 }
 0x3c3   :  { %v1578_v12 = vadd.f32 %v1683_v38, %v1577_v11 }
 0x3c4   :  { %v1597_v13 = vpop.f32.mrf.mxu0 }
 0x3c5   :  { %v1598_v14 = vadd.f32 %v1597_v13, %v1578_v12 }
 0x3c7   :  { %v1600_v16 = vmax.f32 %v1598_v14, 0.0 }
 0x3c9   :  { %1637 = vmatmul.f32.vlgmr.msrb.gmra.mxu1 %v1600_v16 }
 0x446   :  { %v1638_v18 = vpop.f32.mrf.mxu1 }
 0x447   :  { %v1639_v19 = vadd.f32 %v1684_v17, %v1638_v18 }
 0x449   :  { %1641 = vst [vmem:[#allocation20] sm:$0xff] %v1639_v19 }
 0x44a   :  { %1652 = dma.vmem_to_hbm [thread:$0]  %s1648_s16, 128, %s1650_s5, [#allocation4]  }
 0x44b   :  { %1985 = dma.done.wait [#allocation4], 128  }
 0x44c   :  { %1986 = vsyncadd [#allocation4], 4294967168 }
 0x44d   :  { %1657 = vsyncpa [#allocation3], 1 }
 0x44e   :  { %1658 = vsyncpa [#allocation6], 1 }
 0x44f   :  { %1659 = vsyncpa [#allocation9], 1 }
 0x450   :  { %1660 = vsyncpa [#allocation12], 1 }
 0x451   :  { %1661 = vsyncpa [#allocation15], 1 }
 0x452   :  { %1662 = vsyncpa [#allocation18], 1 }
 0x453   :  { %1663 = vsyncpa [#allocation4], 1 }

</bundles_post_ra>
